<compile_context>
chip_gen: v7x
topology: tpu7x:2x2x1
jax: 0.10.0
libtpu: 0.0.40
codegen_flags: <defaults>
</compile_context>

<pallas_src>
import jax
import jax.numpy as jnp
from jax.experimental import pallas as pl
from jax.experimental.pallas import tpu as pltpu

# ----------------------------- model hyper-params (small, deterministic) ---------------
B = 2                 # batch
C_IN = 4              # input image channels
C_IN_PAD = 8          # channels padded for sublane-friendly K
HW = 16               # input spatial size (after im_scale)
C_FEAT = 128          # backbone feature channels (lane-dense)
C_RPN = 128           # rpn hidden channels (lane-dense)
LANE = 128
POOL = 4              # roi_align output size (POOL x POOL)
TOP_DIM = 2048        # backbone.top output dim (fixed by nn.Linear(2048, ...) in the module)
N_CLASSES = 8
ROIS_PER_IMAGE = 4
R_TOTAL = B * ROIS_PER_IMAGE                 # 8
HEAD_N = 4 * N_CLASSES + N_CLASSES           # concatenated bbox+cls output width (40)
ROWS = B * HW * HW                           # 512 flattened feature-map rows
PP = POOL * POOL                             # 16 pooled positions per RoI

_VMEM_LIMIT = 16 * 1024 * 1024               # per-step working set is ~2 MiB after tiling


# ----------------------------- Pallas kernel 1: backbone + RPN (fused) ------------------
def _backbone_rpn_kernel(x_ref, wb_ref, bb_ref, wr_ref, br_ref, wc_ref, bc_ref,
                         feat_ref, score_ref):
    # backbone 1x1 conv + relu
    x = x_ref[...]
    feat = jnp.dot(x.astype(jnp.bfloat16), wb_ref[...],
                   preferred_element_type=jnp.float32) + bb_ref[...]
    feat = jnp.maximum(feat, 0.0)
    feat_bf16 = feat.astype(jnp.bfloat16)
    feat_ref[...] = feat_bf16                        # bf16 feature map (halved writeback)
    # rpn conv + relu (kept resident in vregs, no HBM round-trip)
    rpn = jnp.dot(feat_bf16, wr_ref[...],
                  preferred_element_type=jnp.float32) + br_ref[...]
    rpn = jnp.maximum(rpn, 0.0)
    # rpn objectness: lane-padded weight (col 0 real); store raw logit of the real
    # column only -- top_k downstream is invariant under the monotone sigmoid.
    logits = jnp.dot(rpn.astype(jnp.bfloat16), wc_ref[...],
                     preferred_element_type=jnp.float32) + bc_ref[...]
    score_ref[...] = logits[:, :1]


def pallas_backbone_rpn(x_flat, params):
    return pl.pallas_call(
        _backbone_rpn_kernel,
        out_shape=(
            jax.ShapeDtypeStruct((ROWS, C_FEAT), jnp.bfloat16),   # feature map (bf16)
            jax.ShapeDtypeStruct((ROWS, 1), jnp.float32),         # objectness logits
        ),
        grid=(1,),
        in_specs=[
            pl.BlockSpec((ROWS, C_IN_PAD), lambda i: (0, 0)),
            pl.BlockSpec((C_IN_PAD, C_FEAT), lambda i: (0, 0)),
            pl.BlockSpec((1, C_FEAT), lambda i: (0, 0)),
            pl.BlockSpec((C_FEAT, C_RPN), lambda i: (0, 0)),
            pl.BlockSpec((1, C_RPN), lambda i: (0, 0)),
            pl.BlockSpec((C_RPN, LANE), lambda i: (0, 0)),
            pl.BlockSpec((1, LANE), lambda i: (0, 0)),
        ],
        out_specs=(
            pl.BlockSpec((ROWS, C_FEAT), lambda i: (0, 0)),
            pl.BlockSpec((ROWS, 1), lambda i: (0, 0)),
        ),
        compiler_params=pltpu.CompilerParams(
            dimension_semantics=("arbitrary",),
            vmem_limit_bytes=_VMEM_LIMIT,
        ),
    )(
        x_flat,
        params["backbone_w"], params["backbone_b"],
        params["rpn_conv_w"], params["rpn_conv_b"],
        params["rpn_cls_w"], params["rpn_cls_b"],
    )


# ----------------------------- Pallas kernel 2: RoIAlign-matmul + top + head (fused) ----
def _roi_top_head_kernel(wroi_ref, feat_ref, topw_ref, topb_ref, wh_ref, bh_ref,
                         comb_ref, pooled_sc, acc_sc):
    p = pl.program_id(0)

    @pl.when(p == 0)
    def _():
        # stage 1: RoIAlign as ONE full-M bilinear-weight matmul (bf16 x bf16, f32 acc)
        pooled_sc[...] = jnp.dot(wroi_ref[...], feat_ref[...],
                                 preferred_element_type=jnp.float32)   # (P*P*R, C_FEAT)
        acc_sc[...] = jnp.zeros_like(acc_sc)

    # stage 2: top Linear(2048->2048) accumulated over the p-tiled weight stream
    start = pl.multiple_of(p * R_TOTAL, R_TOTAL)
    pooled_p = pooled_sc[pl.ds(start, R_TOTAL), :].astype(jnp.bfloat16)   # (R, C_FEAT)
    acc_sc[...] += jnp.dot(pooled_p, topw_ref[...],
                           preferred_element_type=jnp.float32)            # (R, 2048)

    @pl.when(p == pl.num_programs(0) - 1)
    def _():
        top = jnp.maximum(acc_sc[...] + topb_ref[...], 0.0)               # (R, 2048)
        # fused bbox_pred + cls_score: one MXU pass over K=2048, lane-padded weight.
        comb = jnp.dot(top.astype(jnp.bfloat16), wh_ref[...],
                       preferred_element_type=jnp.float32) + bh_ref[...]  # (R, 128)
        comb_ref[...] = comb                                              # lane-dense store


def pallas_roi_top_head(wroi_flat, feat, topw, topb, wh, bh):
    return pl.pallas_call(
        _roi_top_head_kernel,
        out_shape=jax.ShapeDtypeStruct((R_TOTAL, LANE), jnp.float32),
        grid=(PP,),
        in_specs=[
            pl.BlockSpec((PP * R_TOTAL, ROWS), lambda p: (0, 0)),    # wroi (128,512) bf16, once
            pl.BlockSpec((ROWS, C_FEAT), lambda p: (0, 0)),          # feat (512,128) bf16, once
            pl.BlockSpec((C_FEAT, TOP_DIM), lambda p: (p, 0)),       # top_w tile, pipelined
            pl.BlockSpec((1, TOP_DIM), lambda p: (0, 0)),
            pl.BlockSpec((TOP_DIM, LANE), lambda p: (0, 0)),         # head_w, once
            pl.BlockSpec((1, LANE), lambda p: (0, 0)),
        ],
        out_specs=pl.BlockSpec((R_TOTAL, LANE), lambda p: (0, 0)),
        scratch_shapes=[
            pltpu.VMEM((PP * R_TOTAL, C_FEAT), jnp.float32),   # pooled_all
            pltpu.VMEM((R_TOTAL, TOP_DIM), jnp.float32),       # top-linear accumulator
        ],
        compiler_params=pltpu.CompilerParams(
            dimension_semantics=("arbitrary",),
            vmem_limit_bytes=_VMEM_LIMIT,
        ),
    )(wroi_flat, feat, topw, topb, wh, bh)


# ----------------------------- glue: proposals + bilinear weight operator ---------------
def rpn_proposals(scores, h, w, im_scale, H, W, Bn):
    """Top-k scoring locations -> fixed-size boxes clipped to the scaled image."""
    # TODO(synk): data-dependent top_k proposal selection stays in plain JAX.
    stride_y = (h * im_scale) / H
    stride_x = (w * im_scale) / W
    top_scores, top_idx = jax.lax.top_k(scores, ROIS_PER_IMAGE)          # [B, k]
    iy = (top_idx // W).astype(jnp.float32)
    ix = (top_idx % W).astype(jnp.float32)
    cx = (ix + 0.5) * stride_x
    cy = (iy + 0.5) * stride_y
    box = 4.0 * max(stride_x, stride_y)
    x1 = jnp.clip(cx - box / 2.0, 0.0, w * im_scale - 1.0)
    y1 = jnp.clip(cy - box / 2.0, 0.0, h * im_scale - 1.0)
    x2 = jnp.clip(cx + box / 2.0, 0.0, w * im_scale - 1.0)
    y2 = jnp.clip(cy + box / 2.0, 0.0, h * im_scale - 1.0)
    batch_idx = jnp.broadcast_to(
        jnp.arange(Bn, dtype=jnp.float32)[:, None], (Bn, ROIS_PER_IMAGE))
    proposals = jnp.stack([batch_idx, x1, y1, x2, y2], axis=-1).reshape(-1, 5)
    return proposals, top_scores.reshape(-1)


def build_roi_weights(proposals, Bn, H, W, spatial_scale, out_size):
    """Bilinear RoIAlign expressed as a one-hot weight operator (no gathers).
    Returns W_flat of shape (P*P*R, B*H*W) in bf16, rows ordered p-major, with
    pooled_all = W_flat @ feat_flat  ->  rows [p*R + r]."""
    # TODO(synk): single bin-center sample, no sampling_ratio averaging / aligned offset,
    # so it will not match torchvision.ops.roi_align numerically.
    n_cols = Bn * H * W

    def one(roi):
        b = roi[0].astype(jnp.int32)
        x1, y1 = roi[1] * spatial_scale, roi[2] * spatial_scale
        x2, y2 = roi[3] * spatial_scale, roi[4] * spatial_scale
        roi_w = jnp.maximum(x2 - x1, 1.0)
        roi_h = jnp.maximum(y2 - y1, 1.0)
        ys = y1 + (jnp.arange(out_size, dtype=jnp.float32) + 0.5) * (roi_h / out_size)
        xs = x1 + (jnp.arange(out_size, dtype=jnp.float32) + 0.5) * (roi_w / out_size)
        gy, gx = jnp.meshgrid(ys, xs, indexing="ij")
        y0 = jnp.clip(jnp.floor(gy).astype(jnp.int32), 0, H - 1)
        x0 = jnp.clip(jnp.floor(gx).astype(jnp.int32), 0, W - 1)
        y1i = jnp.clip(y0 + 1, 0, H - 1)
        x1i = jnp.clip(x0 + 1, 0, W - 1)
        wy = jnp.clip(gy - y0.astype(jnp.float32), 0.0, 1.0)
        wx = jnp.clip(gx - x0.astype(jnp.float32), 0.0, 1.0)
        base = b * (H * W)

        def corner(yy, xx, wgt):
            idx = base + yy * W + xx
            return wgt[..., None] * jax.nn.one_hot(idx, n_cols, dtype=jnp.float32)

        wmat = (corner(y0, x0, (1 - wy) * (1 - wx))
                + corner(y0, x1i, (1 - wy) * wx)
                + corner(y1i, x0, wy * (1 - wx))
                + corner(y1i, x1i, wy * wx))
        return wmat.reshape(out_size * out_size, n_cols)

    # out_axes=1 -> (P*P, R, n_cols) directly (p-major), then flatten + cast to bf16.
    w_all = jax.vmap(one, out_axes=1)(proposals)
    return w_all.reshape(out_size * out_size * R_TOTAL, n_cols).astype(jnp.bfloat16)


# ----------------------------- forward ---------------------------------------------------
def faster_rcnn_forward(params, images_nchw, h, w, im_scale):
    # NCHW -> NHWC, flatten spatial, pad channels to the weight's padded K
    x = jnp.transpose(images_nchw, (0, 2, 3, 1)).astype(jnp.float32)
    Bn, H, W, Cin = x.shape
    x_flat = x.reshape(Bn * H * W, Cin)
    x_flat = jnp.pad(x_flat, ((0, 0), (0, C_IN_PAD - Cin)))

    # fused backbone + RPN (one Pallas kernel); scores are raw logits (col 0 only)
    feat_flat, score_logits = pallas_backbone_rpn(x_flat, params)
    scores = score_logits[:, 0].reshape(Bn, H * W)

    # proposals (plain JAX: top_k + box math); top_k invariant under sigmoid
    proposals, _ = rpn_proposals(scores, h, w, im_scale, H, W, Bn)

    # RoIAlign-as-matmul + top Linear + bbox/cls head in one pipelined Pallas kernel
    spatial_scale = W / (w * im_scale)
    wroi_flat = build_roi_weights(proposals, Bn, H, W, spatial_scale, POOL)  # (P*P*R, B*H*W) bf16
    comb = pallas_roi_top_head(
        wroi_flat, feat_flat,
        params["top_w"], params["top_b"],
        params["head_w"], params["head_b"],
    )                                                                        # (R, 128) lane-dense
    bbox_pred = comb[:, : 4 * N_CLASSES]
    cls_logits = comb[:, 4 * N_CLASSES:HEAD_N]
    cls_prob = jax.nn.softmax(cls_logits, axis=-1)                           # tiny (8x8) in XLA
    return {"bbox_pred": bbox_pred, "cls_prob": cls_prob, "rois": proposals}


# ----------------------------- deterministic param init ---------------------------------
def init_params(key):
    ks = jax.random.split(key, 12)
    s = 0.02

    def w(k, shape):
        return s * jax.random.normal(k, shape, jnp.float32)

    # backbone 1x1 conv: real K = C_IN, padded to C_IN_PAD with zero rows
    backbone_w = jnp.zeros((C_IN_PAD, C_FEAT), jnp.float32)
    backbone_w = backbone_w.at[:C_IN].set(w(ks[0], (C_IN, C_FEAT)))

    # rpn objectness: real N = 1, lane-padded to 128 zero columns
    rpn_cls_w = jnp.zeros((C_RPN, LANE), jnp.float32)
    rpn_cls_w = rpn_cls_w.at[:, :1].set(w(ks[4], (C_RPN, 1)))
    rpn_cls_b = jnp.zeros((1, LANE), jnp.float32)
    rpn_cls_b = rpn_cls_b.at[0, 0].set(w(ks[5], (1,))[0])

    # concatenated bbox_pred (4*nc) + cls_score (nc) weight, lane-padded to 128
    head_w = jnp.zeros((TOP_DIM, LANE), jnp.float32)
    head_w = head_w.at[:, : 4 * N_CLASSES].set(w(ks[8], (TOP_DIM, 4 * N_CLASSES)))
    head_w = head_w.at[:, 4 * N_CLASSES:HEAD_N].set(w(ks[10], (TOP_DIM, N_CLASSES)))
    head_b = jnp.zeros((1, LANE), jnp.float32)
    head_b = head_b.at[0, : 4 * N_CLASSES].set(w(ks[9], (4 * N_CLASSES,)))
    head_b = head_b.at[0, 4 * N_CLASSES:HEAD_N].set(w(ks[11], (N_CLASSES,)))

    return {
        # matmul weights stored in bf16 (MXU-native on all gens); biases f32, pre-(1,N)
        "backbone_w": backbone_w.astype(jnp.bfloat16),
        "backbone_b": w(ks[1], (1, C_FEAT)),
        "rpn_conv_w": w(ks[2], (C_FEAT, C_RPN)).astype(jnp.bfloat16),
        "rpn_conv_b": w(ks[3], (1, C_RPN)),
        "rpn_cls_w": rpn_cls_w.astype(jnp.bfloat16),
        "rpn_cls_b": rpn_cls_b,
        # top_w rows ordered (p, c): row p*C_FEAT + c multiplies pooled bin p, channel c
        "top_w": w(ks[6], (PP * C_FEAT, TOP_DIM)).astype(jnp.bfloat16),
        "top_b": w(ks[7], (1, TOP_DIM)),
        "head_w": head_w.astype(jnp.bfloat16),
        "head_b": head_b,
    }


if __name__ == "__main__":
    key = jax.random.PRNGKey(0)
    k_param, k_img = jax.random.split(key)
    params = init_params(k_param)
    images = jax.random.normal(k_img, (B, C_IN, HW, HW), jnp.float32)  # NCHW like PyTorch

    # original image 64x64, im_scale 0.25 -> scaled network input 16x16 (stride 1 features)
    h, w_img, im_scale = 64.0, 64.0, 0.25

    out = faster_rcnn_forward(params, images, h, w_img, im_scale)
    jax.block_until_ready(out)

    assert out["bbox_pred"].shape == (R_TOTAL, 4 * N_CLASSES)
    assert out["cls_prob"].shape == (R_TOTAL, N_CLASSES)
    assert out["rois"].shape == (R_TOTAL, 5)
    # softmax rows sum to 1
    assert jnp.allclose(jnp.sum(out["cls_prob"], axis=1), 1.0, atol=1e-4)
    print("KERNEL_OK")
</pallas_src>

<mosaic_0001>
module attributes {stable_mosaic.version = 11 : i64} {
  func.func @_backbone_rpn_kernel(%arg0: i32, %arg1: memref<512x8xf32, #tpu.memory_space<vmem>>, %arg2: memref<8x128xbf16, #tpu.memory_space<vmem>>, %arg3: memref<1x128xf32, #tpu.memory_space<vmem>>, %arg4: memref<128x128xbf16, #tpu.memory_space<vmem>>, %arg5: memref<1x128xf32, #tpu.memory_space<vmem>>, %arg6: memref<128x128xbf16, #tpu.memory_space<vmem>>, %arg7: memref<1x128xf32, #tpu.memory_space<vmem>>, %arg8: memref<512x128xbf16, #tpu.memory_space<vmem>>, %arg9: memref<512x1xf32, #tpu.memory_space<vmem>>) attributes {dimension_semantics = [#tpu.dimension_semantics<arbitrary>], iteration_bounds = array<i64: 1>, scalar_prefetch = 0 : i64, scratch_operands = 0 : i64, tpu.core_type = #tpu.core_type<tc>, window_params = [{pipeline_mode = #tpu.pipeline_mode<synchronous>, transform_indices = @transform_0, window_bounds = array<i64: 512, 8>}, {pipeline_mode = #tpu.pipeline_mode<synchronous>, transform_indices = @transform_1, window_bounds = array<i64: 8, 128>}, {pipeline_mode = #tpu.pipeline_mode<synchronous>, transform_indices = @transform_2, window_bounds = array<i64: 1, 128>}, {pipeline_mode = #tpu.pipeline_mode<synchronous>, transform_indices = @transform_3, window_bounds = array<i64: 128, 128>}, {pipeline_mode = #tpu.pipeline_mode<synchronous>, transform_indices = @transform_4, window_bounds = array<i64: 1, 128>}, {pipeline_mode = #tpu.pipeline_mode<synchronous>, transform_indices = @transform_5, window_bounds = array<i64: 128, 128>}, {pipeline_mode = #tpu.pipeline_mode<synchronous>, transform_indices = @transform_6, window_bounds = array<i64: 1, 128>}, {pipeline_mode = #tpu.pipeline_mode<synchronous>, transform_indices = @transform_7, window_bounds = array<i64: 512, 128>}, {pipeline_mode = #tpu.pipeline_mode<synchronous>, transform_indices = @transform_8, window_bounds = array<i64: 512, 1>}]} {
    %c0 = arith.constant 0 : index
    %c0_0 = arith.constant 0 : index
    %0 = vector.load %arg1[%c0, %c0_0] : memref<512x8xf32, #tpu.memory_space<vmem>>, vector<512x8xf32>
    %1 = arith.truncf %0 : vector<512x8xf32> to vector<512x8xbf16>
    %c0_1 = arith.constant 0 : index
    %c0_2 = arith.constant 0 : index
    %2 = vector.load %arg2[%c0_1, %c0_2] : memref<8x128xbf16, #tpu.memory_space<vmem>>, vector<8x128xbf16>
    %cst = arith.constant dense<0.000000e+00> : vector<512x128xf32>
    %3 = tpu.matmul %1, %2, %cst {dimension_numbers = #tpu.dot_dimension_numbers<[1], [0], [0], [1], [0, 0, 1, 1], [], []>} : vector<512x8xbf16>, vector<8x128xbf16>, vector<512x128xf32> -> vector<512x128xf32>
    %c0_3 = arith.constant 0 : index
    %c0_4 = arith.constant 0 : index
    %4 = vector.load %arg3[%c0_3, %c0_4] : memref<1x128xf32, #tpu.memory_space<vmem>>, vector<1x128xf32>
    %5 = vector.broadcast %4 : vector<1x128xf32> to vector<512x128xf32>
    %6 = arith.addf %3, %5 : vector<512x128xf32>
    %cst_5 = arith.constant 0.000000e+00 : f32
    %7 = vector.broadcast %cst_5 : f32 to vector<512x128xf32>
    %8 = arith.maximumf %6, %7 : vector<512x128xf32>
    %9 = arith.truncf %8 : vector<512x128xf32> to vector<512x128xbf16>
    %c0_6 = arith.constant 0 : index
    %c0_7 = arith.constant 0 : index
    %10 = vector.load %arg8[%c0_6, %c0_7] : memref<512x128xbf16, #tpu.memory_space<vmem>>, vector<512x128xbf16>
    tpu.vector_store %arg8[%c0_6, %c0_7], %9 {strides = array<i32>} : memref<512x128xbf16, #tpu.memory_space<vmem>>, vector<512x128xbf16>,
    %c0_8 = arith.constant 0 : index
    %c0_9 = arith.constant 0 : index
    %11 = vector.load %arg4[%c0_8, %c0_9] : memref<128x128xbf16, #tpu.memory_space<vmem>>, vector<128x128xbf16>
    %cst_10 = arith.constant dense<0.000000e+00> : vector<512x128xf32>
    %12 = tpu.matmul %9, %11, %cst_10 {dimension_numbers = #tpu.dot_dimension_numbers<[1], [0], [0], [1], [0, 0, 1, 1], [], []>} : vector<512x128xbf16>, vector<128x128xbf16>, vector<512x128xf32> -> vector<512x128xf32>
    %c0_11 = arith.constant 0 : index
    %c0_12 = arith.constant 0 : index
    %13 = vector.load %arg5[%c0_11, %c0_12] : memref<1x128xf32, #tpu.memory_space<vmem>>, vector<1x128xf32>
    %14 = vector.broadcast %13 : vector<1x128xf32> to vector<512x128xf32>
    %15 = arith.addf %12, %14 : vector<512x128xf32>
    %cst_13 = arith.constant 0.000000e+00 : f32
    %16 = vector.broadcast %cst_13 : f32 to vector<512x128xf32>
    %17 = arith.maximumf %15, %16 : vector<512x128xf32>
    %18 = arith.truncf %17 : vector<512x128xf32> to vector<512x128xbf16>
    %c0_14 = arith.constant 0 : index
    %c0_15 = arith.constant 0 : index
    %19 = vector.load %arg6[%c0_14, %c0_15] : memref<128x128xbf16, #tpu.memory_space<vmem>>, vector<128x128xbf16>
    %cst_16 = arith.constant dense<0.000000e+00> : vector<512x128xf32>
    %20 = tpu.matmul %18, %19, %cst_16 {dimension_numbers = #tpu.dot_dimension_numbers<[1], [0], [0], [1], [0, 0, 1, 1], [], []>} : vector<512x128xbf16>, vector<128x128xbf16>, vector<512x128xf32> -> vector<512x128xf32>
    %c0_17 = arith.constant 0 : index
    %c0_18 = arith.constant 0 : index
    %21 = vector.load %arg7[%c0_17, %c0_18] : memref<1x128xf32, #tpu.memory_space<vmem>>, vector<1x128xf32>
    %22 = vector.broadcast %21 : vector<1x128xf32> to vector<512x128xf32>
    %23 = arith.addf %20, %22 : vector<512x128xf32>
    %24 = vector.extract_strided_slice %23 {offsets = [0, 0], sizes = [512, 1], strides = [1, 1]} : vector<512x128xf32> to vector<512x1xf32>
    %c0_19 = arith.constant 0 : index
    %c0_20 = arith.constant 0 : index
    %25 = vector.load %arg9[%c0_19, %c0_20] : memref<512x1xf32, #tpu.memory_space<vmem>>, vector<512x1xf32>
    tpu.vector_store %arg9[%c0_19, %c0_20], %24 {strides = array<i32>} : memref<512x1xf32, #tpu.memory_space<vmem>>, vector<512x1xf32>,
    return
  }
  func.func @transform_0(%arg0: i32) -> (i32, i32) {
    %c0_i32 = arith.constant 0 : i32
    %c0_i32_0 = arith.constant 0 : i32
    %c0_i32_1 = arith.constant 0 : i32
    return %c0_i32, %c0_i32_0 : i32, i32
  }
  func.func @transform_1(%arg0: i32) -> (i32, i32) {
    %c0_i32 = arith.constant 0 : i32
    %c0_i32_0 = arith.constant 0 : i32
    %c0_i32_1 = arith.constant 0 : i32
    return %c0_i32, %c0_i32_0 : i32, i32
  }
  func.func @transform_2(%arg0: i32) -> (i32, i32) {
    %c0_i32 = arith.constant 0 : i32
    %c0_i32_0 = arith.constant 0 : i32
    %c0_i32_1 = arith.constant 0 : i32
    return %c0_i32, %c0_i32_0 : i32, i32
  }
  func.func @transform_3(%arg0: i32) -> (i32, i32) {
    %c0_i32 = arith.constant 0 : i32
    %c0_i32_0 = arith.constant 0 : i32
    %c0_i32_1 = arith.constant 0 : i32
    return %c0_i32, %c0_i32_0 : i32, i32
  }
  func.func @transform_4(%arg0: i32) -> (i32, i32) {
    %c0_i32 = arith.constant 0 : i32
    %c0_i32_0 = arith.constant 0 : i32
    %c0_i32_1 = arith.constant 0 : i32
    return %c0_i32, %c0_i32_0 : i32, i32
  }
  func.func @transform_5(%arg0: i32) -> (i32, i32) {
    %c0_i32 = arith.constant 0 : i32
    %c0_i32_0 = arith.constant 0 : i32
    %c0_i32_1 = arith.constant 0 : i32
    return %c0_i32, %c0_i32_0 : i32, i32
  }
  func.func @transform_6(%arg0: i32) -> (i32, i32) {
    %c0_i32 = arith.constant 0 : i32
    %c0_i32_0 = arith.constant 0 : i32
    %c0_i32_1 = arith.constant 0 : i32
    return %c0_i32, %c0_i32_0 : i32, i32
  }
  func.func @transform_7(%arg0: i32) -> (i32, i32) {
    %c0_i32 = arith.constant 0 : i32
    %c0_i32_0 = arith.constant 0 : i32
    %c0_i32_1 = arith.constant 0 : i32
    return %c0_i32, %c0_i32_0 : i32, i32
  }
  func.func @transform_8(%arg0: i32) -> (i32, i32) {
    %c0_i32 = arith.constant 0 : i32
    %c0_i32_0 = arith.constant 0 : i32
    %c0_i32_1 = arith.constant 0 : i32
    return %c0_i32, %c0_i32_0 : i32, i32
  }
}

</mosaic_0001>

<bundles_post_ra>
// kernel: tpu_custom_call.1
= control target key start
LH: loop header
LB: loop body
LE: loop exit
PB: predicated region body
PF: predicated region fallthrough
CT: control target
= control target key end

     0   :  { %vm231_vm0 = vcmask 1043456   ;;  %vm134_vm1 = vcmask 64512   ;;  %s3407_s0 = inlined_call_operand.vmem [shape: f32[512,8], index: 0, kind: input, shape index: {}]   ;;  %s3408_s1 = inlined_call_operand.vmem [shape: bf16[8,128], index: 1, kind: input, shape index: {}]   ;;  %s3409_s2 = inlined_call_operand.vmem [shape: f32[1,128], index: 2, kind: input, shape index: {}]   ;;  %s3410_s3 = inlined_call_operand.vmem [shape: bf16[128,128], index: 3, kind: input, shape index: {}]   ;;  %s3411_s4 = inlined_call_operand.vmem [shape: f32[1,128], index: 4, kind: input, shape index: {}]   ;;  %s3412_s5 = inlined_call_operand.vmem [shape: bf16[128,128], index: 5, kind: input, shape index: {}]   ;;  %s3413_s6 = inlined_call_operand.vmem [shape: f32[1,128], index: 6, kind: input, shape index: {}]   ;;  %s3414_s7 = inlined_call_operand.hbm [shape: bf16[512,128], index: 7, kind: output, shape index: {0}]   ;;  %s3415_s8 = inlined_call_operand.vmem [shape: f32[512,1], index: 8, kind: output, shape index: {1}]  }
   0x1   :  { %v126_v0 = vld [vmem:[%s3408_s1] sm:$0xf]  ;;  %v31_v2 = vld [vmem:[%s3407_s0 + $0x8] sm:$0xff]  ;;  %v32_v5 = vld [vmem:[%s3407_s0 + $0x10] sm:$0xff] }
   0x2   :  { %v30_v1 = vld [vmem:[%s3407_s0] sm:$0xff]  ;;  %2520 = vmatprep.subr.msk.bf16.mxu0 %vm231_vm0, %v126_v0  ;;  %v233_v3 = vsel %vm231_vm0, %v126_v0, 0  ;;  %v33_v6 = vld [vmem:[%s3407_s0 + $0x18] sm:$0xff]  ;;  %2521 = vmatprep.subr.msk.bf16.mxu1 %vm231_vm0, %v126_v0  ;;  %v35_v9 = vld [vmem:[%s3407_s0 + $0x28] sm:$0xff] }
   0x3   :  { %v94_v4 = vpack.c.bf16 %v31_v2, %v30_v1  ;;  %v34_v7 = vld [vmem:[%s3407_s0 + $0x20] sm:$0xff]  ;;  %2293 = vmatpush3.bf16.msra.mxu0 %v233_v3  ;;  %v95_v8 = vpack.c.bf16 %v33_v6, %v32_v5  ;;  %2519 = vmatpush3.bf16.msra.mxu1 %v233_v3  ;;  %v36_v11 = vld [vmem:[%s3407_s0 + $0x30] sm:$0xff]  ;;  %v37_v12 = vld [vmem:[%s3407_s0 + $0x38] sm:$0xff] }
   0x4   :  { %v96_v10 = vpack.c.bf16 %v35_v9, %v34_v7  ;;  %v38_v13 = vld [vmem:[%s3407_s0 + $0x40] sm:$0xff]  ;;  %v39_v14 = vld [vmem:[%s3407_s0 + $0x48] sm:$0xff]  ;;  %v97_v15 = vpack.c.bf16 %v37_v12, %v36_v11  ;;  %v64_v19 = vld [vmem:[%s3407_s0 + $0x110] sm:$0xff] }
   0x5   :  { %2294 = vmatprep.mubr.msk.bf16.mxu0 %vm134_vm1, %v94_v4  ;;  %v98_v16 = vpack.c.bf16 %v39_v14, %v38_v13  ;;  %v62_v17 = vld [vmem:[%s3407_s0 + $0x100] sm:$0xff]  ;;  %v63_v18 = vld [vmem:[%s3407_s0 + $0x108] sm:$0xff]  ;;  %v65_v21 = vld [vmem:[%s3407_s0 + $0x118] sm:$0xff] }
   0x6   :  { %2295 = vmatmul.mubr.msk.bf16.vlgmr.msra.gmra.mrb[0].mxu0 %vm134_vm1, %v95_v8  ;;  %v110_v20 = vpack.c.bf16 %v63_v18, %v62_v17  ;;  %v66_v22 = vld [vmem:[%s3407_s0 + $0x120] sm:$0xff]  ;;  %v67_v23 = vld [vmem:[%s3407_s0 + $0x128] sm:$0xff]  ;;  %v111_v24 = vpack.c.bf16 %v65_v21, %v64_v19  ;;  %v40_v26 = vld [vmem:[%s3407_s0 + $0x50] sm:$0xff] }
   0x7   :  { %2298 = vmatprep.mubr.msk.bf16.mxu0 %vm134_vm1, %v96_v10  ;;  %v112_v25 = vpack.c.bf16 %v67_v23, %v66_v22  ;;  %v41_v27 = vld [vmem:[%s3407_s0 + $0x58] sm:$0xff]  ;;  %v42_v28 = vld [vmem:[%s3407_s0 + $0x60] sm:$0xff]  ;;  %v43_v29 = vld [vmem:[%s3407_s0 + $0x68] sm:$0xff] }
   0x8   :  { %2326 = vmatprep.mubr.msk.bf16.mxu1 %vm134_vm1, %v110_v20  ;;  %v68_v30 = vld [vmem:[%s3407_s0 + $0x130] sm:$0xff]  ;;  %v69_v31 = vld [vmem:[%s3407_s0 + $0x138] sm:$0xff]  ;;  %v99_v32 = vpack.c.bf16 %v41_v27, %v40_v26  ;;  %v70_v33 = vld [vmem:[%s3407_s0 + $0x140] sm:$0xff]  ;;  %v100_v35 = vpack.c.bf16 %v43_v29, %v42_v28 }
   0x9   :  { %2327 = vmatmul.mubr.msk.bf16.vlgmr.msra.gmra.mrb[0].mxu1 %vm134_vm1, %v111_v24  ;;  %v71_v34 = vld [vmem:[%s3407_s0 + $0x148] sm:$0xff]  ;;  %v113_v36 = vpack.c.bf16 %v69_v31, %v68_v30  ;;  %v44_v37 = vld [vmem:[%s3407_s0 + $0x70] sm:$0xff]  ;;  %v45_v38 = vld [vmem:[%s3407_s0 + $0x78] sm:$0xff] }
   0xa   :  { %2330 = vmatprep.mubr.msk.bf16.mxu1 %vm134_vm1, %v112_v25  ;;  %v114_v39 = vpack.c.bf16 %v71_v34, %v70_v33  ;;  %v46_v40 = vld [vmem:[%s3407_s0 + $0x80] sm:$0xff]  ;;  %v47_v41 = vld [vmem:[%s3407_s0 + $0x88] sm:$0xff]  ;;  %v72_v42 = vld [vmem:[%s3407_s0 + $0x150] sm:$0xff]  ;;  %v101_v47 = vpack.c.bf16 %v45_v38, %v44_v37 }
   0xb   :  { %v73_v43 = vld [vmem:[%s3407_s0 + $0x158] sm:$0xff]  ;;  %v2525_v44 = vld [vmem:[%s3410_s3] sm:$0xff]   ;;  %v2526_v45 = vld [vmem:[%s3410_s3 + $0x8] sm:$0xff]   ;;  %v102_v49 = vpack.c.bf16 %v47_v41, %v46_v40 }
   0xc   :  { %v74_v46 = vld [vmem:[%s3407_s0 + $0x160] sm:$0xff]  ;;  %2358 = vmatprep.subr.bf16.mxu1 %v2525_v44  ;;  %v75_v48 = vld [vmem:[%s3407_s0 + $0x168] sm:$0xff]  ;;  %v2527_v50 = vld [vmem:[%s3410_s3 + $0x10] sm:$0xff]   ;;  %v115_v51 = vpack.c.bf16 %v73_v43, %v72_v42 }
   0xd   :  { %2359 = vmatpush3.bf16.msra.mxu1 %v2525_v44  ;;  %v48_v52 = vld [vmem:[%s3407_s0 + $0x90] sm:$0xff]  ;;  %v49_v53 = vld [vmem:[%s3407_s0 + $0x98] sm:$0xff]  ;;  %v116_v54 = vpack.c.bf16 %v75_v48, %v74_v46  ;;  %v50_v56 = vld [vmem:[%s3407_s0 + $0xa0] sm:$0xff] }
   0xe   :  { %2299 = vmatmul.mubr.msk.bf16.gmra.mrb[4].mxu0 %vm134_vm1, %v97_v15  ;;  %2360 = vmatprep.subr.bf16.mxu1 %v2526_v45  ;;  %v2528_v55 = vld [vmem:[%s3410_s3 + $0x18] sm:$0xff]   ;;  %v51_v57 = vld [vmem:[%s3407_s0 + $0xa8] sm:$0xff]  ;;  %v76_v58 = vld [vmem:[%s3407_s0 + $0x170] sm:$0xff]  ;;  %v103_v63 = vpack.c.bf16 %v49_v53, %v48_v52 }
   0xf   :  { %2302 = vmatprep.mubr.msk.bf16.mxu0 %vm134_vm1, %v98_v16  ;;  %v77_v59 = vld [vmem:[%s3407_s0 + $0x178] sm:$0xff]  ;;  %v78_v60 = vld [vmem:[%s3407_s0 + $0x180] sm:$0xff]  ;;  %v79_v61 = vld [vmem:[%s3407_s0 + $0x188] sm:$0xff]  ;;  %v104_v0 = vpack.c.bf16 %v51_v57, %v50_v56 }
  0x10   :  { %v2529_v62 = vld [vmem:[%s3410_s3 + $0x20] sm:$0xff]  }
  0x11   :  { %2331 = vmatmul.mubr.msk.bf16.gmra.mrb[4].mxu1 %vm134_vm1, %v113_v36 }
  0x12   :  { %2334 = vmatprep.mubr.msk.bf16.mxu1 %vm134_vm1, %v114_v39  ;;  %2361 = vmatpush3.bf16.msra.mxu1 %v2526_v45 }
  0x13   :  { %2362 = vmatprep.subr.bf16.mxu1 %v2527_v50 }
  0x16   :  { %2303 = vmatmul.mubr.msk.bf16.gmra.mrb[8].mxu0 %vm134_vm1, %v99_v32  ;;  %2363 = vmatpush3.bf16.msra.mxu1 %v2527_v50 }
  0x17   :  { %2306 = vmatprep.mubr.msk.bf16.mxu0 %vm134_vm1, %v100_v35  ;;  %2364 = vmatprep.subr.bf16.mxu1 %v2528_v55 }
  0x19   :  { %2335 = vmatmul.mubr.msk.bf16.gmra.mrb[8].mxu1 %vm134_vm1, %v115_v51 }
  0x1a   :  { %2338 = vmatprep.mubr.msk.bf16.mxu1 %vm134_vm1, %v116_v54 }
  0x1e   :  { %2307 = vmatmul.mubr.msk.bf16.gmra.mrb[12].mxu0 %vm134_vm1, %v101_v47 }
  0x1f   :  { %2310 = vmatprep.mubr.msk.bf16.mxu0 %vm134_vm1, %v102_v49 }
  0x20   :  { %14 = vsyncpa [#allocation3], 0  ;;  %v117_v1 = vpack.c.bf16 %v77_v59, %v76_v58  ;;  %v118_v2 = vpack.c.bf16 %v79_v61, %v78_v60  ;;  %2365 = vmatpush3.bf16.msra.mxu1 %v2528_v55  ;;  %v52_v3 = vld [vmem:[%s3407_s0 + $0xb0] sm:$0xff]  ;;  %v53_v4 = vld [vmem:[%s3407_s0 + $0xb8] sm:$0xff] }
  0x21   :  { %2366 = vmatprep.subr.bf16.mxu1 %v2529_v62  ;;  %v2530_v5 = vld [vmem:[%s3410_s3 + $0x28] sm:$0xff]   ;;  %v54_v6 = vld [vmem:[%s3407_s0 + $0xc0] sm:$0xff]  ;;  %v80_v8 = vld [vmem:[%s3407_s0 + $0x190] sm:$0xff]  ;;  %v105_v10 = vpack.c.bf16 %v53_v4, %v52_v3 }
  0x22   :  { %v55_v7 = vld [vmem:[%s3407_s0 + $0xc8] sm:$0xff]  ;;  %2339 = vmatmul.mubr.msk.bf16.gmra.mrb[12].mxu1 %vm134_vm1, %v117_v1  ;;  %v81_v9 = vld [vmem:[%s3407_s0 + $0x198] sm:$0xff]  ;;  %v82_v11 = vld [vmem:[%s3407_s0 + $0x1a0] sm:$0xff] }
  0x23   :  { %2342 = vmatprep.mubr.msk.bf16.mxu1 %vm134_vm1, %v118_v2  ;;  %v83_v12 = vld [vmem:[%s3407_s0 + $0x1a8] sm:$0xff]  ;;  %v106_v13 = vpack.c.bf16 %v55_v7, %v54_v6  ;;  %v2531_v14 = vld [vmem:[%s3410_s3 + $0x30] sm:$0xff]   ;;  %v119_v15 = vpack.c.bf16 %v81_v9, %v80_v8  ;;  %v57_v18 = vld [vmem:[%s3407_s0 + $0xd8] sm:$0xff] }
  0x24   :  { %2367 = vmatpush3.bf16.msra.mxu1 %v2529_v62  ;;  %v120_v16 = vpack.c.bf16 %v83_v12, %v82_v11  ;;  %v56_v17 = vld [vmem:[%s3407_s0 + $0xd0] sm:$0xff]  ;;  %v58_v19 = vld [vmem:[%s3407_s0 + $0xe0] sm:$0xff]  ;;  %v59_v20 = vld [vmem:[%s3407_s0 + $0xe8] sm:$0xff] }
  0x25   :  { %2368 = vmatprep.subr.bf16.mxu1 %v2530_v5  ;;  %v84_v21 = vld [vmem:[%s3407_s0 + $0x1b0] sm:$0xff]  ;;  %v85_v22 = vld [vmem:[%s3407_s0 + $0x1b8] sm:$0xff]  ;;  %v107_v23 = vpack.c.bf16 %v57_v18, %v56_v17  ;;  %v86_v24 = vld [vmem:[%s3407_s0 + $0x1c0] sm:$0xff]  ;;  %v108_v26 = vpack.c.bf16 %v59_v20, %v58_v19 }
  0x26   :  { %2311 = vmatmul.mubr.msk.bf16.gmra.mrb[16].mxu0 %vm134_vm1, %v103_v63  ;;  %v87_v25 = vld [vmem:[%s3407_s0 + $0x1c8] sm:$0xff]  ;;  %v121_v27 = vpack.c.bf16 %v85_v22, %v84_v21  ;;  %v60_v29 = vld [vmem:[%s3407_s0 + $0xf0] sm:$0xff]  ;;  %v61_v30 = vld [vmem:[%s3407_s0 + $0xf8] sm:$0xff] }
  0x27   :  { %2314 = vmatprep.mubr.msk.bf16.mxu0 %vm134_vm1, %v104_v0  ;;  %v122_v28 = vpack.c.bf16 %v87_v25, %v86_v24  ;;  %v88_v31 = vld [vmem:[%s3407_s0 + $0x1d0] sm:$0xff]  ;;  %v89_v32 = vld [vmem:[%s3407_s0 + $0x1d8] sm:$0xff]  ;;  %v109_v33 = vpack.c.bf16 %v61_v30, %v60_v29  ;;  %v90_v34 = vld [vmem:[%s3407_s0 + $0x1e0] sm:$0xff] }
  0x28   :  { %2369 = vmatpush3.bf16.msra.mxu1 %v2530_v5  ;;  %v91_v35 = vld [vmem:[%s3407_s0 + $0x1e8] sm:$0xff]  ;;  %v123_v36 = vpack.c.bf16 %v89_v32, %v88_v31  ;;  %v92_v38 = vld [vmem:[%s3407_s0 + $0x1f0] sm:$0xff]  ;;  %v93_v39 = vld [vmem:[%s3407_s0 + $0x1f8] sm:$0xff] }
  0x29   :  { %2370 = vmatprep.subr.bf16.mxu1 %v2531_v14  ;;  %v124_v37 = vpack.c.bf16 %v91_v35, %v90_v34  ;;  %v125_v40 = vpack.c.bf16 %v93_v39, %v92_v38  ;;  %v2532_v41 = vld [vmem:[%s3410_s3 + $0x38] sm:$0xff]   ;;  %v2867_v42 = vld [vmem:[%s3409_s2] ss:$0 sm:$0xff]  ;;  %v2534_v51 = vld [vmem:[%s3412_s5 + $0x8] sm:$0xff]  }
  0x2a   :  { %2343 = vmatmul.mubr.msk.bf16.gmra.mrb[16].mxu1 %vm134_vm1, %v119_v15  ;;  %v2533_v50 = vld [vmem:[%s3412_s5] sm:$0xff]   ;;  %v2535_v58 = vld [vmem:[%s3412_s5 + $0x10] sm:$0xff]   ;;  %v2536_v6 = vld [vmem:[%s3412_s5 + $0x18] sm:$0xff]  }
  0x2b   :  { %2346 = vmatprep.mubr.msk.bf16.mxu1 %vm134_vm1, %v120_v16  ;;  %2438 = vmatprep.subr.bf16.mxu0 %v2533_v50  ;;  %v2537_v21 = vld [vmem:[%s3412_s5 + $0x20] sm:$0xff]  }
  0x2c   :  { %2371 = vmatpush3.bf16.msra.mxu1 %v2531_v14  ;;  %2439 = vmatpush3.bf16.msra.mxu0 %v2533_v50 }
  0x2d   :  { %2372 = vmatprep.subr.bf16.mxu1 %v2532_v41  ;;  %2440 = vmatprep.subr.bf16.mxu0 %v2534_v51 }
  0x2e   :  { %2315 = vmatmul.mubr.msk.bf16.gmra.mrb[20].mxu0 %vm134_vm1, %v105_v10 }
  0x2f   :  { %2318 = vmatprep.mubr.msk.bf16.mxu0 %vm134_vm1, %v106_v13 }
  0x30   :  { %2373 = vmatpush3.bf16.msra.mxu1 %v2532_v41  ;;  %2441 = vmatpush3.bf16.msra.mxu0 %v2534_v51 }
  0x31   :  { %2442 = vmatprep.subr.bf16.mxu0 %v2535_v58 }
  0x32   :  { %2347 = vmatmul.mubr.msk.bf16.gmra.mrb[20].mxu1 %vm134_vm1, %v121_v27 }
  0x33   :  { %2350 = vmatprep.mubr.msk.bf16.mxu1 %vm134_vm1, %v122_v28 }
  0x34   :  { %2443 = vmatpush3.bf16.msra.mxu0 %v2535_v58 }
  0x35   :  { %2444 = vmatprep.subr.bf16.mxu0 %v2536_v6 }
  0x36   :  { %2319 = vmatmul.mubr.msk.bf16.gmra.mrb[24].mxu0 %vm134_vm1, %v107_v23 }
  0x37   :  { %2322 = vmatprep.mubr.msk.bf16.mxu0 %vm134_vm1, %v108_v26 }
  0x38   :  { %2445 = vmatpush3.bf16.msra.mxu0 %v2536_v6 }
  0x39   :  { %2446 = vmatprep.subr.bf16.mxu0 %v2537_v21 }
  0x3a   :  { %2351 = vmatmul.mubr.msk.bf16.gmra.mrb[24].mxu1 %vm134_vm1, %v123_v36  ;;  %v2538_v36 = vld [vmem:[%s3412_s5 + $0x28] sm:$0xff]  }
  0x3b   :  { %2354 = vmatprep.mubr.msk.bf16.mxu1 %vm134_vm1, %v124_v37 }
  0x3c   :  { %2447 = vmatpush3.bf16.msra.mxu0 %v2537_v21 }
  0x3d   :  { %2448 = vmatprep.subr.bf16.mxu0 %v2538_v36 }
  0x3e   :  { %2323 = vmatmul.mubr.msk.bf16.gmra.mrb[28].mxu0 %vm134_vm1, %v109_v33 }
  0x40   :  { %2449 = vmatpush3.bf16.msra.mxu0 %v2538_v36 }
  0x42   :  { %2355 = vmatmul.mubr.msk.bf16.gmra.mrb[28].mxu1 %vm134_vm1, %v125_v40 }
  0xd9   :  { %v2296_v43 = vpop.f32.mrb[0].mxu0 }
  0xda   :  { %v278_v44 = vadd.f32 %v2296_v43, %v2867_v42  ;;  %v269_v45 = vpop.f32.mrb[1].mxu0 }
  0xdb   :  { %v270_v46 = vadd.f32 %v2867_v42, %v269_v45  ;;  %v2297_v47 = vpop.f32.mrb[2].mxu0 }
  0xdc   :  { %v281_v48 = vadd.f32 %v2297_v47, %v2867_v42  ;;  %v272_v49 = vpop.f32.mrb[3].mxu0  ;;  %v526_v53 = vmax.f32 %v278_v44, 0.0  ;;  %v2328_v1 = vpop.f32.mrb[0].mxu1 }
  0xdd   :  { %v273_v52 = vadd.f32 %v2867_v42, %v272_v49  ;;  %v524_v55 = vmax.f32 %v270_v46, 0.0  ;;  %v406_v4 = vadd.f32 %v2328_v1, %v2867_v42  ;;  %v397_v5 = vpop.f32.mrb[1].mxu1 }
  0xde   :  { %v527_v54 = vmax.f32 %v281_v48, 0.0  ;;  %v398_v8 = vadd.f32 %v2867_v42, %v397_v5  ;;  %v2329_v9 = vpop.f32.mrb[2].mxu1 }
  0xdf   :  { %v525_v56 = vmax.f32 %v273_v52, 0.0  ;;  %v558_v12 = vmax.f32 %v406_v4, 0.0  ;;  %v409_v13 = vadd.f32 %v2329_v9, %v2867_v42  ;;  %v400_v14 = vpop.f32.mrb[3].mxu1  ;;  %v2539_v52 = vld [vmem:[%s3412_s5 + $0x30] sm:$0xff]  }
  0xe0   :  { %v589_v57 = vpack.c.bf16 %v527_v54, %v526_v53  ;;  %v556_v17 = vmax.f32 %v398_v8, 0.0  ;;  %v401_v18 = vadd.f32 %v2867_v42, %v400_v14  ;;  %2450 = vmatprep.subr.bf16.mxu0 %v2539_v52 }
  0xe1   :  { %v588_v59 = vpack.c.bf16 %v525_v56, %v524_v55  ;;  %v2300_v60 = vpop.f32.mrb[4].mxu0  ;;  %v559_v20 = vmax.f32 %v409_v13, 0.0  ;;  %2451 = vmatpush3.bf16.msra.mxu0 %v2539_v52 }
  0xe2   :  { %2148 = vst [vmem:[#allocation2 + $0x8] sm:$0xff] %v589_v57   ;;  %v294_v61 = vadd.f32 %v2300_v60, %v2867_v42  ;;  %v285_v62 = vpop.f32.mrb[5].mxu0  ;;  %v557_v24 = vmax.f32 %v401_v18, 0.0 }
  0xe3   :  { %1992 = vst [vmem:[#allocation2] sm:$0xff] %v588_v59   ;;  %v286_v63 = vadd.f32 %v2867_v42, %v285_v62  ;;  %v2301_v0 = vpop.f32.mrb[6].mxu0  ;;  %2374 = vmatprep.mubr.bf16.mxu1 %v588_v59  ;;  %v2897_v27 = vpack.c.bf16 %v559_v20, %v558_v12 }
  0xe4   :  { %v297_v2 = vadd.f32 %v2301_v0, %v2867_v42  ;;  %v288_v3 = vpop.f32.mrb[7].mxu0  ;;  %2375 = vmatmul.mubr.bf16.vlgmr.msra.gmra.mrb[32].mxu1 %v589_v57  ;;  %v530_v10 = vmax.f32 %v294_v61, 0.0  ;;  %v2900_v30 = vpack.c.bf16 %v557_v24, %v556_v17  ;;  %v2332_v31 = vpop.f32.mrb[4].mxu1 }
  0xe5   :  { %v289_v7 = vadd.f32 %v2867_v42, %v288_v3  ;;  %v528_v15 = vmax.f32 %v286_v63, 0.0  ;;  %2164 = vst [vmem:[#allocation2 + $0x88] sm:$0xff] %v2897_v27   ;;  %v422_v34 = vadd.f32 %v2332_v31, %v2867_v42  ;;  %v413_v35 = vpop.f32.mrb[5].mxu1 }
  0xe6   :  { %v531_v11 = vmax.f32 %v297_v2, 0.0  ;;  %2163 = vst [vmem:[#allocation2 + $0x80] sm:$0xff] %v2900_v30   ;;  %v414_v38 = vadd.f32 %v2867_v42, %v413_v35  ;;  %v2333_v39 = vpop.f32.mrb[6].mxu1 }
  0xe7   :  { %v529_v16 = vmax.f32 %v289_v7, 0.0  ;;  %v562_v43 = vmax.f32 %v422_v34, 0.0  ;;  %v425_v44 = vadd.f32 %v2333_v39, %v2867_v42  ;;  %v416_v45 = vpop.f32.mrb[7].mxu1 }
  0xe8   :  { %v591_v19 = vpack.c.bf16 %v531_v11, %v530_v10  ;;  %v560_v48 = vmax.f32 %v414_v38, 0.0  ;;  %v417_v49 = vadd.f32 %v2867_v42, %v416_v45 }
  0xe9   :  { %v590_v22 = vpack.c.bf16 %v529_v16, %v528_v15  ;;  %v2304_v23 = vpop.f32.mrb[8].mxu0  ;;  %v563_v51 = vmax.f32 %v425_v44, 0.0 }
  0xea   :  { %2150 = vst [vmem:[#allocation2 + $0x18] sm:$0xff] %v591_v19   ;;  %v310_v25 = vadd.f32 %v2304_v23, %v2867_v42  ;;  %v301_v26 = vpop.f32.mrb[9].mxu0  ;;  %v561_v55 = vmax.f32 %v417_v49, 0.0 }
  0xeb   :  { %2149 = vst [vmem:[#allocation2 + $0x10] sm:$0xff] %v590_v22   ;;  %v302_v28 = vadd.f32 %v2867_v42, %v301_v26  ;;  %v2305_v29 = vpop.f32.mrb[10].mxu0  ;;  %2378 = vmatprep.mubr.bf16.mxu1 %v590_v22  ;;  %v2917_v58 = vpack.c.bf16 %v563_v51, %v562_v43 }
  0xec   :  { %v313_v32 = vadd.f32 %v2305_v29, %v2867_v42  ;;  %v304_v33 = vpop.f32.mrb[11].mxu0  ;;  %2379 = vmatmul.mubr.bf16.gmra.mrb[36].mxu1 %v591_v19  ;;  %v534_v40 = vmax.f32 %v310_v25, 0.0  ;;  %v2920_v61 = vpack.c.bf16 %v561_v55, %v560_v48  ;;  %v2336_v62 = vpop.f32.mrb[8].mxu1 }
  0xed   :  { %v305_v37 = vadd.f32 %v2867_v42, %v304_v33  ;;  %v532_v46 = vmax.f32 %v302_v28, 0.0  ;;  %2166 = vst [vmem:[#allocation2 + $0x98] sm:$0xff] %v2917_v58   ;;  %v438_v1 = vadd.f32 %v2336_v62, %v2867_v42  ;;  %v429_v2 = vpop.f32.mrb[9].mxu1 }
  0xee   :  { %v535_v41 = vmax.f32 %v313_v32, 0.0  ;;  %2165 = vst [vmem:[#allocation2 + $0x90] sm:$0xff] %v2920_v61   ;;  %v430_v4 = vadd.f32 %v2867_v42, %v429_v2  ;;  %v2337_v5 = vpop.f32.mrb[10].mxu1 }
  0xef   :  { %v533_v47 = vmax.f32 %v305_v37, 0.0  ;;  %v566_v8 = vmax.f32 %v438_v1, 0.0  ;;  %v441_v9 = vadd.f32 %v2337_v5, %v2867_v42  ;;  %v432_v10 = vpop.f32.mrb[11].mxu1 }
  0xf0   :  { %v593_v50 = vpack.c.bf16 %v535_v41, %v534_v40  ;;  %v564_v13 = vmax.f32 %v430_v4, 0.0  ;;  %v433_v14 = vadd.f32 %v2867_v42, %v432_v10 }
  0xf1   :  { %v592_v53 = vpack.c.bf16 %v533_v47, %v532_v46  ;;  %v2308_v54 = vpop.f32.mrb[12].mxu0  ;;  %v567_v16 = vmax.f32 %v441_v9, 0.0 }
  0xf2   :  { %2152 = vst [vmem:[#allocation2 + $0x28] sm:$0xff] %v593_v50   ;;  %v326_v56 = vadd.f32 %v2308_v54, %v2867_v42  ;;  %v317_v57 = vpop.f32.mrb[13].mxu0  ;;  %v565_v19 = vmax.f32 %v433_v14, 0.0 }
  0xf3   :  { %2151 = vst [vmem:[#allocation2 + $0x20] sm:$0xff] %v592_v53   ;;  %v318_v59 = vadd.f32 %v2867_v42, %v317_v57  ;;  %v2309_v60 = vpop.f32.mrb[14].mxu0  ;;  %2382 = vmatprep.mubr.bf16.mxu1 %v592_v53  ;;  %v2931_v22 = vpack.c.bf16 %v567_v16, %v566_v8 }
  0xf4   :  { %v329_v63 = vadd.f32 %v2309_v60, %v2867_v42  ;;  %v320_v0 = vpop.f32.mrb[15].mxu0  ;;  %2383 = vmatmul.mubr.bf16.gmra.mrb[40].mxu1 %v593_v50  ;;  %v538_v6 = vmax.f32 %v326_v56, 0.0  ;;  %v2934_v25 = vpack.c.bf16 %v565_v19, %v564_v13 }
  0xf5   :  { %v321_v3 = vadd.f32 %v2867_v42, %v320_v0  ;;  %v536_v11 = vmax.f32 %v318_v59, 0.0  ;;  %v2340_v26 = vpop.f32.mrb[12].mxu1  ;;  %2168 = vst [vmem:[#allocation2 + $0xa8] sm:$0xff] %v2931_v22  }
  0xf6   :  { %v539_v7 = vmax.f32 %v329_v63, 0.0  ;;  %v454_v31 = vadd.f32 %v2340_v26, %v2867_v42  ;;  %v445_v32 = vpop.f32.mrb[13].mxu1  ;;  %2167 = vst [vmem:[#allocation2 + $0xa0] sm:$0xff] %v2934_v25  }
  0xf7   :  { %v537_v12 = vmax.f32 %v321_v3, 0.0  ;;  %v446_v34 = vadd.f32 %v2867_v42, %v445_v32  ;;  %v2341_v35 = vpop.f32.mrb[14].mxu1 }
  0xf8   :  { %v595_v15 = vpack.c.bf16 %v539_v7, %v538_v6  ;;  %v570_v38 = vmax.f32 %v454_v31, 0.0  ;;  %v457_v39 = vadd.f32 %v2341_v35, %v2867_v42  ;;  %v448_v40 = vpop.f32.mrb[15].mxu1 }
  0xf9   :  { %v594_v17 = vpack.c.bf16 %v537_v12, %v536_v11  ;;  %v2312_v18 = vpop.f32.mrb[16].mxu0  ;;  %v568_v44 = vmax.f32 %v446_v34, 0.0  ;;  %v449_v45 = vadd.f32 %v2867_v42, %v448_v40 }
  0xfa   :  { %2154 = vst [vmem:[#allocation2 + $0x38] sm:$0xff] %v595_v15   ;;  %v342_v20 = vadd.f32 %v2312_v18, %v2867_v42  ;;  %v333_v21 = vpop.f32.mrb[17].mxu0  ;;  %v571_v47 = vmax.f32 %v457_v39, 0.0 }
  0xfb   :  { %2153 = vst [vmem:[#allocation2 + $0x30] sm:$0xff] %v594_v17   ;;  %v334_v23 = vadd.f32 %v2867_v42, %v333_v21  ;;  %v2313_v24 = vpop.f32.mrb[18].mxu0  ;;  %2386 = vmatprep.mubr.bf16.mxu1 %v594_v17  ;;  %v569_v50 = vmax.f32 %v449_v45, 0.0 }
  0xfc   :  { %v345_v28 = vadd.f32 %v2313_v24, %v2867_v42  ;;  %v336_v29 = vpop.f32.mrb[19].mxu0  ;;  %2387 = vmatmul.mubr.bf16.gmra.mrb[44].mxu1 %v595_v15  ;;  %v542_v36 = vmax.f32 %v342_v20, 0.0  ;;  %v2945_v53 = vpack.c.bf16 %v571_v47, %v570_v38 }
  0xfd   :  { %v337_v33 = vadd.f32 %v2867_v42, %v336_v29  ;;  %v540_v41 = vmax.f32 %v334_v23, 0.0  ;;  %v2948_v56 = vpack.c.bf16 %v569_v50, %v568_v44  ;;  %v2344_v57 = vpop.f32.mrb[16].mxu1 }
  0xfe   :  { %v543_v37 = vmax.f32 %v345_v28, 0.0  ;;  %2170 = vst [vmem:[#allocation2 + $0xb8] sm:$0xff] %v2945_v53   ;;  %v470_v62 = vadd.f32 %v2344_v57, %v2867_v42  ;;  %v461_v63 = vpop.f32.mrb[17].mxu1 }
  0xff   :  { %v541_v43 = vmax.f32 %v337_v33, 0.0  ;;  %2169 = vst [vmem:[#allocation2 + $0xb0] sm:$0xff] %v2948_v56   ;;  %v462_v1 = vadd.f32 %v2867_v42, %v461_v63  ;;  %v2345_v2 = vpop.f32.mrb[18].mxu1 }
 0x100   :  { %v597_v46 = vpack.c.bf16 %v543_v37, %v542_v36  ;;  %v574_v5 = vmax.f32 %v470_v62, 0.0  ;;  %v473_v6 = vadd.f32 %v2345_v2, %v2867_v42  ;;  %v464_v7 = vpop.f32.mrb[19].mxu1 }
 0x101   :  { %v596_v48 = vpack.c.bf16 %v541_v43, %v540_v41  ;;  %v2316_v49 = vpop.f32.mrb[20].mxu0  ;;  %v572_v10 = vmax.f32 %v462_v1, 0.0  ;;  %v465_v11 = vadd.f32 %v2867_v42, %v464_v7 }
 0x102   :  { %2156 = vst [vmem:[#allocation2 + $0x48] sm:$0xff] %v597_v46   ;;  %v358_v51 = vadd.f32 %v2316_v49, %v2867_v42  ;;  %v349_v52 = vpop.f32.mrb[21].mxu0  ;;  %v575_v13 = vmax.f32 %v473_v6, 0.0 }
 0x103   :  { %2155 = vst [vmem:[#allocation2 + $0x40] sm:$0xff] %v596_v48   ;;  %v350_v54 = vadd.f32 %v2867_v42, %v349_v52  ;;  %v2317_v55 = vpop.f32.mrb[22].mxu0  ;;  %2390 = vmatprep.mubr.bf16.mxu1 %v596_v48  ;;  %v573_v16 = vmax.f32 %v465_v11, 0.0 }
 0x104   :  { %v361_v59 = vadd.f32 %v2317_v55, %v2867_v42  ;;  %v352_v60 = vpop.f32.mrb[23].mxu0  ;;  %2391 = vmatmul.mubr.bf16.gmra.mrb[48].mxu1 %v597_v46  ;;  %v546_v3 = vmax.f32 %v358_v51, 0.0  ;;  %v2959_v19 = vpack.c.bf16 %v575_v13, %v574_v5 }
 0x105   :  { %v353_v0 = vadd.f32 %v2867_v42, %v352_v60  ;;  %v544_v8 = vmax.f32 %v350_v54, 0.0  ;;  %v2962_v23 = vpack.c.bf16 %v573_v16, %v572_v10  ;;  %v2348_v24 = vpop.f32.mrb[20].mxu1 }
 0x106   :  { %v547_v4 = vmax.f32 %v361_v59, 0.0  ;;  %2172 = vst [vmem:[#allocation2 + $0xc8] sm:$0xff] %v2959_v19   ;;  %v486_v29 = vadd.f32 %v2348_v24, %v2867_v42  ;;  %v477_v31 = vpop.f32.mrb[21].mxu1 }
 0x107   :  { %v545_v9 = vmax.f32 %v353_v0, 0.0  ;;  %2171 = vst [vmem:[#allocation2 + $0xc0] sm:$0xff] %v2962_v23   ;;  %v478_v33 = vadd.f32 %v2867_v42, %v477_v31  ;;  %v2349_v34 = vpop.f32.mrb[22].mxu1 }
 0x108   :  { %v599_v12 = vpack.c.bf16 %v547_v4, %v546_v3  ;;  %v578_v37 = vmax.f32 %v486_v29, 0.0  ;;  %v489_v38 = vadd.f32 %v2349_v34, %v2867_v42  ;;  %v480_v39 = vpop.f32.mrb[23].mxu1 }
 0x109   :  { %v598_v14 = vpack.c.bf16 %v545_v9, %v544_v8  ;;  %v2320_v15 = vpop.f32.mrb[24].mxu0  ;;  %v576_v43 = vmax.f32 %v478_v33, 0.0  ;;  %v481_v44 = vadd.f32 %v2867_v42, %v480_v39 }
 0x10a   :  { %2158 = vst [vmem:[#allocation2 + $0x58] sm:$0xff] %v599_v12   ;;  %v374_v17 = vadd.f32 %v2320_v15, %v2867_v42  ;;  %v365_v18 = vpop.f32.mrb[25].mxu0  ;;  %v579_v46 = vmax.f32 %v489_v38, 0.0 }
 0x10b   :  { %2157 = vst [vmem:[#allocation2 + $0x50] sm:$0xff] %v598_v14   ;;  %v366_v20 = vadd.f32 %v2867_v42, %v365_v18  ;;  %v2321_v21 = vpop.f32.mrb[26].mxu0  ;;  %2394 = vmatprep.mubr.bf16.mxu1 %v598_v14  ;;  %v577_v49 = vmax.f32 %v481_v44, 0.0 }
 0x10c   :  { %v377_v26 = vadd.f32 %v2321_v21, %v2867_v42  ;;  %v368_v28 = vpop.f32.mrb[27].mxu0  ;;  %2395 = vmatmul.mubr.bf16.gmra.mrb[52].mxu1 %v599_v12  ;;  %v550_v35 = vmax.f32 %v374_v17, 0.0  ;;  %v2973_v52 = vpack.c.bf16 %v579_v46, %v578_v37 }
 0x10d   :  { %v369_v32 = vadd.f32 %v2867_v42, %v368_v28  ;;  %v548_v40 = vmax.f32 %v366_v20, 0.0  ;;  %v614_v57 = vpack.c.bf16 %v577_v49, %v576_v43  ;;  %v2352_v59 = vpop.f32.mrb[24].mxu1 }
 0x10e   :  { %v551_v36 = vmax.f32 %v377_v26, 0.0  ;;  %2174 = vst [vmem:[#allocation2 + $0xd8] sm:$0xff] %v2973_v52   ;;  %v502_v63 = vadd.f32 %v2352_v59, %v2867_v42  ;;  %v493_v0 = vpop.f32.mrb[25].mxu1 }
 0x10f   :  { %v549_v41 = vmax.f32 %v369_v32, 0.0  ;;  %2173 = vst [vmem:[#allocation2 + $0xd0] sm:$0xff] %v614_v57   ;;  %v494_v2 = vadd.f32 %v2867_v42, %v493_v0  ;;  %v2353_v3 = vpop.f32.mrb[26].mxu1 }
 0x110   :  { %v601_v45 = vpack.c.bf16 %v551_v36, %v550_v35  ;;  %v582_v6 = vmax.f32 %v502_v63, 0.0  ;;  %v505_v7 = vadd.f32 %v2353_v3, %v2867_v42  ;;  %v496_v8 = vpop.f32.mrb[27].mxu1 }
 0x111   :  { %v600_v47 = vpack.c.bf16 %v549_v41, %v548_v40  ;;  %v2324_v48 = vpop.f32.mrb[28].mxu0  ;;  %v580_v11 = vmax.f32 %v494_v2, 0.0  ;;  %v497_v12 = vadd.f32 %v2867_v42, %v496_v8 }
 0x112   :  { %2160 = vst [vmem:[#allocation2 + $0x68] sm:$0xff] %v601_v45   ;;  %v390_v50 = vadd.f32 %v2324_v48, %v2867_v42  ;;  %v381_v51 = vpop.f32.mrb[29].mxu0  ;;  %v583_v14 = vmax.f32 %v505_v7, 0.0 }
 0x113   :  { %2159 = vst [vmem:[#allocation2 + $0x60] sm:$0xff] %v600_v47   ;;  %v382_v54 = vadd.f32 %v2867_v42, %v381_v51  ;;  %v2325_v55 = vpop.f32.mrb[30].mxu0  ;;  %2398 = vmatprep.mubr.bf16.mxu1 %v600_v47  ;;  %v581_v16 = vmax.f32 %v497_v12, 0.0 }
 0x114   :  { %v393_v60 = vadd.f32 %v2325_v55, %v2867_v42  ;;  %v384_v62 = vpop.f32.mrb[31].mxu0  ;;  %2399 = vmatmul.mubr.bf16.gmra.mrb[56].mxu1 %v601_v45  ;;  %v554_v4 = vmax.f32 %v390_v50, 0.0  ;;  %v617_v17 = vpack.c.bf16 %v583_v14, %v582_v6 }
 0x115   :  { %v385_v1 = vadd.f32 %v2867_v42, %v384_v62  ;;  %v552_v9 = vmax.f32 %v382_v54, 0.0  ;;  %v616_v18 = vpack.c.bf16 %v581_v16, %v580_v11  ;;  %v2356_v20 = vpop.f32.mrb[28].mxu1 }
 0x116   :  { %v555_v5 = vmax.f32 %v393_v60, 0.0  ;;  %2176 = vst [vmem:[#allocation2 + $0xe8] sm:$0xff] %v617_v17   ;;  %v518_v21 = vadd.f32 %v2356_v20, %v2867_v42  ;;  %v509_v24 = vpop.f32.mrb[29].mxu1 }
 0x117   :  { %v553_v10 = vmax.f32 %v385_v1, 0.0  ;;  %2175 = vst [vmem:[#allocation2 + $0xe0] sm:$0xff] %v616_v18   ;;  %v510_v26 = vadd.f32 %v2867_v42, %v509_v24  ;;  %v2357_v28 = vpop.f32.mrb[30].mxu1 }
 0x118   :  { %v603_v13 = vpack.c.bf16 %v555_v5, %v554_v4  ;;  %v586_v29 = vmax.f32 %v518_v21, 0.0  ;;  %v521_v31 = vadd.f32 %v2357_v28, %v2867_v42  ;;  %v512_v32 = vpop.f32.mrb[31].mxu1 }
 0x119   :  { %v602_v15 = vpack.c.bf16 %v553_v10, %v552_v9  ;;  %v584_v33 = vmax.f32 %v510_v26, 0.0  ;;  %v513_v34 = vadd.f32 %v2867_v42, %v512_v32  ;;  %v2540_v42 = vld [vmem:[%s3412_s5 + $0x38] sm:$0xff]  }
 0x11a   :  { %2162 = vst [vmem:[#allocation2 + $0x78] sm:$0xff] %v603_v13   ;;  %v587_v35 = vmax.f32 %v521_v31, 0.0  ;;  %2452 = vmatprep.subr.bf16.mxu0 %v2540_v42 }
 0x11b   :  { %2161 = vst [vmem:[#allocation2 + $0x70] sm:$0xff] %v602_v15   ;;  %2402 = vmatprep.mubr.bf16.mxu1 %v602_v15  ;;  %v585_v36 = vmax.f32 %v513_v34, 0.0  ;;  %2453 = vmatpush3.bf16.msra.mxu0 %v2540_v42 }
 0x11c   :  { %2403 = vmatmul.mubr.bf16.gmra.mrb[60].mxu1 %v603_v13  ;;  %v619_v37 = vpack.c.bf16 %v587_v35, %v586_v29 }
 0x11d   :  { %2406 = vmatprep.mubr.bf16.mxu1 %v2900_v30  ;;  %v618_v38 = vpack.c.bf16 %v585_v36, %v584_v33 }
 0x11e   :  { %2178 = vst [vmem:[#allocation2 + $0xf8] sm:$0xff] %v619_v37  }
 0x11f   :  { %2177 = vst [vmem:[#allocation2 + $0xf0] sm:$0xff] %v618_v38  }
 0x124   :  { %2407 = vmatmul.mubr.bf16.gmra.mrb[64].mxu1 %v2897_v27  ;;  %v3004_v27 = vld [vmem:[%s3411_s4] ss:$0 sm:$0xff]  ;;  %s2565_s4 = smov [#allocation2]  }
 0x125   :  { %2410 = vmatprep.mubr.bf16.mxu1 %v2920_v61  ;;  %s1794_s5 = sshll.u32 %s2565_s4, 4  ;;  %s1795_s5 = int_to_ptr.vmem [resolvable:$true] %s1794_s5 }
 0x126   :  { %s2541_s9 = scalar_lea.vmem %s1795_s5, 4096  ;;  %p2546_p1 = scmp.lt.s32.totalorder %s1795_s5, %s1795_s5 }
 0x127   :  { %p2542_p0 = scmp.ne.s32.totalorder %s1795_s5, %s2541_s9  ;;  %p2547_p2 = scmp.lt.s32.totalorder %s2541_s9, %s2541_s9 }
 0x129   :  { %p2548_p3 = por %p2547_p2, %p2546_p1 }
 0x12b   :  { %p2549_p4 = pnand %p2548_p3, %p2542_p0 }
 0x12c   :  { %2411 = vmatmul.mubr.bf16.gmra.mrb[68].mxu1 %v2917_v58 }
 0x12d   :  { %2414 = vmatprep.mubr.bf16.mxu1 %v2934_v25 }
 0x134   :  { %2415 = vmatmul.mubr.bf16.gmra.mrb[72].mxu1 %v2931_v22 }
 0x135   :  { %2418 = vmatprep.mubr.bf16.mxu1 %v2948_v56 }
 0x13c   :  { %2419 = vmatmul.mubr.bf16.gmra.mrb[76].mxu1 %v2945_v53 }
 0x13d   :  { %2422 = vmatprep.mubr.bf16.mxu1 %v2962_v23 }
 0x144   :  { %2423 = vmatmul.mubr.bf16.gmra.mrb[80].mxu1 %v2959_v19 }
 0x145   :  { %2426 = vmatprep.mubr.bf16.mxu1 %v614_v57 }
 0x14c   :  { %2427 = vmatmul.mubr.bf16.gmra.mrb[84].mxu1 %v2973_v52 }
 0x14d   :  { %2430 = vmatprep.mubr.bf16.mxu1 %v616_v18 }
 0x154   :  { %2431 = vmatmul.mubr.bf16.gmra.mrb[88].mxu1 %v617_v17 }
 0x155   :  { %2434 = vmatprep.mubr.bf16.mxu1 %v618_v38 }
 0x15c   :  { %2435 = vmatmul.mubr.bf16.gmra.mrb[92].mxu1 %v619_v37 }
 0x1b7   :  { %v2376_v30 = vpop.f32.mrb[32].mxu1 }
 0x1b8   :  { %v1022_v58 = vadd.f32 %v2376_v30, %v3004_v27  ;;  %v1013_v61 = vpop.f32.mrb[33].mxu1 }
 0x1b9   :  { %v1014_v22 = vadd.f32 %v3004_v27, %v1013_v61  ;;  %v2377_v25 = vpop.f32.mrb[34].mxu1 }
 0x1ba   :  { %v1025_v53 = vadd.f32 %v2377_v25, %v3004_v27  ;;  %v1016_v56 = vpop.f32.mrb[35].mxu1  ;;  %v1270_v23 = vmax.f32 %v1022_v58, 0.0 }
 0x1bb   :  { %v1017_v19 = vadd.f32 %v3004_v27, %v1016_v56  ;;  %v1268_v40 = vmax.f32 %v1014_v22, 0.0 }
 0x1bc   :  { %v1271_v39 = vmax.f32 %v1025_v53, 0.0 }
 0x1bd   :  { %v1269_v41 = vmax.f32 %v1017_v19, 0.0 }
 0x1be   :  { %v1333_v43 = vpack.c.bf16 %v1271_v39, %v1270_v23 }
 0x1bf   :  { %v1332_v44 = vpack.c.bf16 %v1269_v41, %v1268_v40  ;;  %v2380_v45 = vpop.f32.mrb[36].mxu1 }
 0x1c0   :  { %v1038_v46 = vadd.f32 %v2380_v45, %v3004_v27  ;;  %v1029_v47 = vpop.f32.mrb[37].mxu1 }
 0x1c1   :  { %v1030_v48 = vadd.f32 %v3004_v27, %v1029_v47  ;;  %v2381_v49 = vpop.f32.mrb[38].mxu1  ;;  %2454 = vmatprep.mubr.bf16.mxu0 %v1332_v44 }
 0x1c2   :  { %v1041_v50 = vadd.f32 %v2381_v49, %v3004_v27  ;;  %v1032_v51 = vpop.f32.mrb[39].mxu1  ;;  %2455 = vmatmul.mubr.bf16.vlgmr.msra.gmra.mrb[32].mxu0 %v1333_v43  ;;  %v1274_v54 = vmax.f32 %v1038_v46, 0.0 }
 0x1c3   :  { %v1033_v52 = vadd.f32 %v3004_v27, %v1032_v51  ;;  %v1272_v57 = vmax.f32 %v1030_v48, 0.0 }
 0x1c4   :  { %v1275_v55 = vmax.f32 %v1041_v50, 0.0 }
 0x1c5   :  { %v1273_v59 = vmax.f32 %v1033_v52, 0.0 }
 0x1c6   :  { %v1335_v60 = vpack.c.bf16 %v1275_v55, %v1274_v54 }
 0x1c7   :  { %v1334_v62 = vpack.c.bf16 %v1273_v59, %v1272_v57  ;;  %v2384_v63 = vpop.f32.mrb[40].mxu1 }
 0x1c8   :  { %v1054_v0 = vadd.f32 %v2384_v63, %v3004_v27  ;;  %v1045_v1 = vpop.f32.mrb[41].mxu1 }
 0x1c9   :  { %v1046_v2 = vadd.f32 %v3004_v27, %v1045_v1  ;;  %v2385_v3 = vpop.f32.mrb[42].mxu1  ;;  %2458 = vmatprep.mubr.bf16.mxu0 %v1334_v62 }
 0x1ca   :  { %v1057_v4 = vadd.f32 %v2385_v3, %v3004_v27  ;;  %v1048_v5 = vpop.f32.mrb[43].mxu1  ;;  %2459 = vmatmul.mubr.bf16.gmra.mrb[36].mxu0 %v1335_v60  ;;  %v1278_v7 = vmax.f32 %v1054_v0, 0.0 }
 0x1cb   :  { %v1049_v6 = vadd.f32 %v3004_v27, %v1048_v5  ;;  %v1276_v9 = vmax.f32 %v1046_v2, 0.0 }
 0x1cc   :  { %v1279_v8 = vmax.f32 %v1057_v4, 0.0 }
 0x1cd   :  { %v1277_v10 = vmax.f32 %v1049_v6, 0.0 }
 0x1ce   :  { %v1337_v11 = vpack.c.bf16 %v1279_v8, %v1278_v7 }
 0x1cf   :  { %v1336_v12 = vpack.c.bf16 %v1277_v10, %v1276_v9  ;;  %v2388_v13 = vpop.f32.mrb[44].mxu1 }
 0x1d0   :  { %v1070_v14 = vadd.f32 %v2388_v13, %v3004_v27  ;;  %v1061_v15 = vpop.f32.mrb[45].mxu1 }
 0x1d1   :  { %v1062_v16 = vadd.f32 %v3004_v27, %v1061_v15  ;;  %v2389_v17 = vpop.f32.mrb[46].mxu1  ;;  %2462 = vmatprep.mubr.bf16.mxu0 %v1336_v12 }
 0x1d2   :  { %v1073_v18 = vadd.f32 %v2389_v17, %v3004_v27  ;;  %v1064_v20 = vpop.f32.mrb[47].mxu1  ;;  %2463 = vmatmul.mubr.bf16.gmra.mrb[40].mxu0 %v1337_v11  ;;  %v1282_v24 = vmax.f32 %v1070_v14, 0.0 }
 0x1d3   :  { %v1065_v21 = vadd.f32 %v3004_v27, %v1064_v20  ;;  %v1280_v28 = vmax.f32 %v1062_v16, 0.0 }
 0x1d4   :  { %v1283_v26 = vmax.f32 %v1073_v18, 0.0 }
 0x1d5   :  { %v1281_v29 = vmax.f32 %v1065_v21, 0.0 }
 0x1d6   :  { %v1339_v31 = vpack.c.bf16 %v1283_v26, %v1282_v24 }
 0x1d7   :  { %v1338_v32 = vpack.c.bf16 %v1281_v29, %v1280_v28  ;;  %v2392_v33 = vpop.f32.mrb[48].mxu1 }
 0x1d8   :  { %v1086_v34 = vadd.f32 %v2392_v33, %v3004_v27  ;;  %v1077_v35 = vpop.f32.mrb[49].mxu1 }
 0x1d9   :  { %v1078_v36 = vadd.f32 %v3004_v27, %v1077_v35  ;;  %v2393_v37 = vpop.f32.mrb[50].mxu1  ;;  %2466 = vmatprep.mubr.bf16.mxu0 %v1338_v32 }
 0x1da   :  { %v1089_v38 = vadd.f32 %v2393_v37, %v3004_v27  ;;  %v1080_v42 = vpop.f32.mrb[51].mxu1  ;;  %2467 = vmatmul.mubr.bf16.gmra.mrb[44].mxu0 %v1339_v31  ;;  %v1286_v58 = vmax.f32 %v1086_v34, 0.0 }
 0x1db   :  { %v1081_v30 = vadd.f32 %v3004_v27, %v1080_v42  ;;  %v1284_v22 = vmax.f32 %v1078_v36, 0.0 }
 0x1dc   :  { %v1287_v61 = vmax.f32 %v1089_v38, 0.0 }
 0x1dd   :  { %v1285_v25 = vmax.f32 %v1081_v30, 0.0 }
 0x1de   :  { %v1341_v53 = vpack.c.bf16 %v1287_v61, %v1286_v58 }
 0x1df   :  { %v1340_v56 = vpack.c.bf16 %v1285_v25, %v1284_v22  ;;  %v2396_v19 = vpop.f32.mrb[52].mxu1 }
 0x1e0   :  { %v1102_v23 = vadd.f32 %v2396_v19, %v3004_v27  ;;  %v1093_v39 = vpop.f32.mrb[53].mxu1 }
 0x1e1   :  { %v1094_v40 = vadd.f32 %v3004_v27, %v1093_v39  ;;  %v2397_v41 = vpop.f32.mrb[54].mxu1  ;;  %2470 = vmatprep.mubr.bf16.mxu0 %v1340_v56 }
 0x1e2   :  { %v1105_v43 = vadd.f32 %v2397_v41, %v3004_v27  ;;  %v1096_v44 = vpop.f32.mrb[55].mxu1  ;;  %2471 = vmatmul.mubr.bf16.gmra.mrb[48].mxu0 %v1341_v53  ;;  %v1290_v46 = vmax.f32 %v1102_v23, 0.0 }
 0x1e3   :  { %v1097_v45 = vadd.f32 %v3004_v27, %v1096_v44  ;;  %v1288_v48 = vmax.f32 %v1094_v40, 0.0 }
 0x1e4   :  { %v1291_v47 = vmax.f32 %v1105_v43, 0.0 }
 0x1e5   :  { %v1289_v49 = vmax.f32 %v1097_v45, 0.0 }
 0x1e6   :  { %v1343_v50 = vpack.c.bf16 %v1291_v47, %v1290_v46 }
 0x1e7   :  { %v1342_v51 = vpack.c.bf16 %v1289_v49, %v1288_v48  ;;  %v2400_v52 = vpop.f32.mrb[56].mxu1 }
 0x1e8   :  { %v1118_v54 = vadd.f32 %v2400_v52, %v3004_v27  ;;  %v1109_v55 = vpop.f32.mrb[57].mxu1 }
 0x1e9   :  { %v1110_v57 = vadd.f32 %v3004_v27, %v1109_v55  ;;  %v2401_v59 = vpop.f32.mrb[58].mxu1  ;;  %2474 = vmatprep.mubr.bf16.mxu0 %v1342_v51 }
 0x1ea   :  { %v1121_v60 = vadd.f32 %v2401_v59, %v3004_v27  ;;  %v1112_v62 = vpop.f32.mrb[59].mxu1  ;;  %2475 = vmatmul.mubr.bf16.gmra.mrb[52].mxu0 %v1343_v50  ;;  %v1294_v0 = vmax.f32 %v1118_v54, 0.0 }
 0x1eb   :  { %v1113_v63 = vadd.f32 %v3004_v27, %v1112_v62  ;;  %v1292_v2 = vmax.f32 %v1110_v57, 0.0 }
 0x1ec   :  { %v1295_v1 = vmax.f32 %v1121_v60, 0.0 }
 0x1ed   :  { %v1293_v3 = vmax.f32 %v1113_v63, 0.0 }
 0x1ee   :  { %v1345_v4 = vpack.c.bf16 %v1295_v1, %v1294_v0 }
 0x1ef   :  { %v1344_v5 = vpack.c.bf16 %v1293_v3, %v1292_v2  ;;  %v2404_v6 = vpop.f32.mrb[60].mxu1 }
 0x1f0   :  { %v1134_v7 = vadd.f32 %v2404_v6, %v3004_v27  ;;  %v1125_v8 = vpop.f32.mrb[61].mxu1 }
 0x1f1   :  { %v1126_v9 = vadd.f32 %v3004_v27, %v1125_v8  ;;  %v2405_v10 = vpop.f32.mrb[62].mxu1  ;;  %2478 = vmatprep.mubr.bf16.mxu0 %v1344_v5 }
 0x1f2   :  { %v1137_v11 = vadd.f32 %v2405_v10, %v3004_v27  ;;  %v1128_v12 = vpop.f32.mrb[63].mxu1  ;;  %2479 = vmatmul.mubr.bf16.gmra.mrb[56].mxu0 %v1345_v4  ;;  %v1298_v14 = vmax.f32 %v1134_v7, 0.0 }
 0x1f3   :  { %v1129_v13 = vadd.f32 %v3004_v27, %v1128_v12  ;;  %v1296_v16 = vmax.f32 %v1126_v9, 0.0 }
 0x1f4   :  { %v1299_v15 = vmax.f32 %v1137_v11, 0.0 }
 0x1f5   :  { %v1297_v17 = vmax.f32 %v1129_v13, 0.0 }
 0x1f6   :  { %v1347_v18 = vpack.c.bf16 %v1299_v15, %v1298_v14 }
 0x1f7   :  { %v1346_v20 = vpack.c.bf16 %v1297_v17, %v1296_v16  ;;  %v2408_v21 = vpop.f32.mrb[64].mxu1 }
 0x1f8   :  { %v1150_v24 = vadd.f32 %v2408_v21, %v3004_v27  ;;  %v1141_v26 = vpop.f32.mrb[65].mxu1 }
 0x1f9   :  { %v1142_v28 = vadd.f32 %v3004_v27, %v1141_v26  ;;  %v2409_v29 = vpop.f32.mrb[66].mxu1  ;;  %2482 = vmatprep.mubr.bf16.mxu0 %v1346_v20 }
 0x1fa   :  { %v1153_v31 = vadd.f32 %v2409_v29, %v3004_v27  ;;  %v1144_v32 = vpop.f32.mrb[67].mxu1  ;;  %2483 = vmatmul.mubr.bf16.gmra.mrb[60].mxu0 %v1347_v18  ;;  %v1302_v34 = vmax.f32 %v1150_v24, 0.0 }
 0x1fb   :  { %v1145_v33 = vadd.f32 %v3004_v27, %v1144_v32  ;;  %v1300_v36 = vmax.f32 %v1142_v28, 0.0 }
 0x1fc   :  { %v1303_v35 = vmax.f32 %v1153_v31, 0.0 }
 0x1fd   :  { %v1301_v37 = vmax.f32 %v1145_v33, 0.0 }
 0x1fe   :  { %v1349_v38 = vpack.c.bf16 %v1303_v35, %v1302_v34 }
 0x1ff   :  { %v1348_v42 = vpack.c.bf16 %v1301_v37, %v1300_v36  ;;  %v2412_v30 = vpop.f32.mrb[68].mxu1 }
 0x200   :  { %v1166_v58 = vadd.f32 %v2412_v30, %v3004_v27  ;;  %v1157_v61 = vpop.f32.mrb[69].mxu1 }
 0x201   :  { %v1158_v22 = vadd.f32 %v3004_v27, %v1157_v61  ;;  %v2413_v25 = vpop.f32.mrb[70].mxu1  ;;  %2486 = vmatprep.mubr.bf16.mxu0 %v1348_v42 }
 0x202   :  { %v1169_v53 = vadd.f32 %v2413_v25, %v3004_v27  ;;  %v1160_v56 = vpop.f32.mrb[71].mxu1  ;;  %2487 = vmatmul.mubr.bf16.gmra.mrb[64].mxu0 %v1349_v38  ;;  %v1306_v23 = vmax.f32 %v1166_v58, 0.0 }
 0x203   :  { %v1161_v19 = vadd.f32 %v3004_v27, %v1160_v56  ;;  %v1304_v40 = vmax.f32 %v1158_v22, 0.0 }
 0x204   :  { %v1307_v39 = vmax.f32 %v1169_v53, 0.0 }
 0x205   :  { %v1305_v41 = vmax.f32 %v1161_v19, 0.0 }
 0x206   :  { %v1351_v43 = vpack.c.bf16 %v1307_v39, %v1306_v23 }
 0x207   :  { %v1350_v44 = vpack.c.bf16 %v1305_v41, %v1304_v40  ;;  %v2416_v45 = vpop.f32.mrb[72].mxu1 }
 0x208   :  { %v1182_v46 = vadd.f32 %v2416_v45, %v3004_v27  ;;  %v1173_v47 = vpop.f32.mrb[73].mxu1 }
 0x209   :  { %v1174_v48 = vadd.f32 %v3004_v27, %v1173_v47  ;;  %v2417_v49 = vpop.f32.mrb[74].mxu1  ;;  %2490 = vmatprep.mubr.bf16.mxu0 %v1350_v44 }
 0x20a   :  { %v1185_v50 = vadd.f32 %v2417_v49, %v3004_v27  ;;  %v1176_v51 = vpop.f32.mrb[75].mxu1  ;;  %2491 = vmatmul.mubr.bf16.gmra.mrb[68].mxu0 %v1351_v43  ;;  %v1310_v54 = vmax.f32 %v1182_v46, 0.0 }
 0x20b   :  { %v1177_v52 = vadd.f32 %v3004_v27, %v1176_v51  ;;  %v1308_v57 = vmax.f32 %v1174_v48, 0.0 }
 0x20c   :  { %v1311_v55 = vmax.f32 %v1185_v50, 0.0 }
 0x20d   :  { %v1309_v59 = vmax.f32 %v1177_v52, 0.0 }
 0x20e   :  { %v1353_v60 = vpack.c.bf16 %v1311_v55, %v1310_v54 }
 0x20f   :  { %v1352_v62 = vpack.c.bf16 %v1309_v59, %v1308_v57  ;;  %v2420_v63 = vpop.f32.mrb[76].mxu1 }
 0x210   :  { %v1198_v0 = vadd.f32 %v2420_v63, %v3004_v27  ;;  %v1189_v1 = vpop.f32.mrb[77].mxu1 }
 0x211   :  { %v1190_v2 = vadd.f32 %v3004_v27, %v1189_v1  ;;  %v2421_v3 = vpop.f32.mrb[78].mxu1  ;;  %2494 = vmatprep.mubr.bf16.mxu0 %v1352_v62 }
 0x212   :  { %v1201_v4 = vadd.f32 %v2421_v3, %v3004_v27  ;;  %v1192_v5 = vpop.f32.mrb[79].mxu1  ;;  %2495 = vmatmul.mubr.bf16.gmra.mrb[72].mxu0 %v1353_v60  ;;  %v1314_v7 = vmax.f32 %v1198_v0, 0.0 }
 0x213   :  { %v1193_v6 = vadd.f32 %v3004_v27, %v1192_v5  ;;  %v1312_v9 = vmax.f32 %v1190_v2, 0.0 }
 0x214   :  { %v1315_v8 = vmax.f32 %v1201_v4, 0.0 }
 0x215   :  { %v1313_v10 = vmax.f32 %v1193_v6, 0.0  ;;  %v3073_v6 = vld [vmem:[%s3413_s6] ss:$0 sm:$0xff] }
 0x216   :  { %v1355_v11 = vpack.c.bf16 %v1315_v8, %v1314_v7 }
 0x217   :  { %v1354_v12 = vpack.c.bf16 %v1313_v10, %v1312_v9  ;;  %v2424_v13 = vpop.f32.mrb[80].mxu1 }
 0x218   :  { %v1214_v14 = vadd.f32 %v2424_v13, %v3004_v27  ;;  %v1205_v15 = vpop.f32.mrb[81].mxu1 }
 0x219   :  { %v1206_v16 = vadd.f32 %v3004_v27, %v1205_v15  ;;  %v2425_v17 = vpop.f32.mrb[82].mxu1  ;;  %2498 = vmatprep.mubr.bf16.mxu0 %v1354_v12 }
 0x21a   :  { %v1217_v18 = vadd.f32 %v2425_v17, %v3004_v27  ;;  %v1208_v20 = vpop.f32.mrb[83].mxu1  ;;  %2499 = vmatmul.mubr.bf16.gmra.mrb[76].mxu0 %v1355_v11  ;;  %v1318_v24 = vmax.f32 %v1214_v14, 0.0 }
 0x21b   :  { %v1209_v21 = vadd.f32 %v3004_v27, %v1208_v20  ;;  %v1316_v28 = vmax.f32 %v1206_v16, 0.0 }
 0x21c   :  { %v1319_v26 = vmax.f32 %v1217_v18, 0.0 }
 0x21d   :  { %v1317_v29 = vmax.f32 %v1209_v21, 0.0 }
 0x21e   :  { %v1357_v31 = vpack.c.bf16 %v1319_v26, %v1318_v24 }
 0x21f   :  { %v1356_v32 = vpack.c.bf16 %v1317_v29, %v1316_v28  ;;  %v2428_v33 = vpop.f32.mrb[84].mxu1 }
 0x220   :  { %v1230_v34 = vadd.f32 %v2428_v33, %v3004_v27  ;;  %v1221_v35 = vpop.f32.mrb[85].mxu1 }
 0x221   :  { %v1222_v36 = vadd.f32 %v3004_v27, %v1221_v35  ;;  %v2429_v37 = vpop.f32.mrb[86].mxu1  ;;  %2502 = vmatprep.mubr.bf16.mxu0 %v1356_v32 }
 0x222   :  { %v1233_v38 = vadd.f32 %v2429_v37, %v3004_v27  ;;  %v1224_v42 = vpop.f32.mrb[87].mxu1  ;;  %2503 = vmatmul.mubr.bf16.gmra.mrb[80].mxu0 %v1357_v31  ;;  %v1322_v58 = vmax.f32 %v1230_v34, 0.0 }
 0x223   :  { %v1225_v30 = vadd.f32 %v3004_v27, %v1224_v42  ;;  %v1320_v22 = vmax.f32 %v1222_v36, 0.0 }
 0x224   :  { %v1323_v61 = vmax.f32 %v1233_v38, 0.0 }
 0x225   :  { %v1321_v25 = vmax.f32 %v1225_v30, 0.0 }
 0x226   :  { %v1359_v53 = vpack.c.bf16 %v1323_v61, %v1322_v58 }
 0x227   :  { %v1358_v56 = vpack.c.bf16 %v1321_v25, %v1320_v22  ;;  %v2432_v19 = vpop.f32.mrb[88].mxu1 }
 0x228   :  { %v1246_v23 = vadd.f32 %v2432_v19, %v3004_v27  ;;  %v1237_v39 = vpop.f32.mrb[89].mxu1 }
 0x229   :  { %v1238_v40 = vadd.f32 %v3004_v27, %v1237_v39  ;;  %v2433_v41 = vpop.f32.mrb[90].mxu1  ;;  %2506 = vmatprep.mubr.bf16.mxu0 %v1358_v56 }
 0x22a   :  { %v1249_v43 = vadd.f32 %v2433_v41, %v3004_v27  ;;  %v1240_v44 = vpop.f32.mrb[91].mxu1  ;;  %2507 = vmatmul.mubr.bf16.gmra.mrb[84].mxu0 %v1359_v53  ;;  %v1326_v46 = vmax.f32 %v1246_v23, 0.0 }
 0x22b   :  { %v1241_v45 = vadd.f32 %v3004_v27, %v1240_v44  ;;  %v1324_v48 = vmax.f32 %v1238_v40, 0.0 }
 0x22c   :  { %v1327_v47 = vmax.f32 %v1249_v43, 0.0 }
 0x22d   :  { %v1325_v49 = vmax.f32 %v1241_v45, 0.0 }
 0x22e   :  { %v1361_v50 = vpack.c.bf16 %v1327_v47, %v1326_v46 }
 0x22f   :  { %v1360_v51 = vpack.c.bf16 %v1325_v49, %v1324_v48  ;;  %v2436_v52 = vpop.f32.mrb[92].mxu1 }
 0x230   :  { %v1262_v54 = vadd.f32 %v2436_v52, %v3004_v27  ;;  %v1253_v55 = vpop.f32.mrb[93].mxu1 }
 0x231   :  { %v1254_v57 = vadd.f32 %v3004_v27, %v1253_v55  ;;  %v2437_v59 = vpop.f32.mrb[94].mxu1  ;;  %2510 = vmatprep.mubr.bf16.mxu0 %v1360_v51 }
 0x232   :  { %v1265_v60 = vadd.f32 %v2437_v59, %v3004_v27  ;;  %v1256_v62 = vpop.f32.mrb[95].mxu1  ;;  %2511 = vmatmul.mubr.bf16.gmra.mrb[88].mxu0 %v1361_v50  ;;  %v1330_v0 = vmax.f32 %v1262_v54, 0.0 }
 0x233   :  { %v1257_v63 = vadd.f32 %v3004_v27, %v1256_v62  ;;  %v1328_v2 = vmax.f32 %v1254_v57, 0.0 }
 0x234   :  { %v1331_v1 = vmax.f32 %v1265_v60, 0.0 }
 0x235   :  { %v1329_v3 = vmax.f32 %v1257_v63, 0.0 }
 0x236   :  { %v1363_v4 = vpack.c.bf16 %v1331_v1, %v1330_v0 }
 0x237   :  { %v1362_v5 = vpack.c.bf16 %v1329_v3, %v1328_v2 }
 0x239   :  { %2514 = vmatprep.mubr.bf16.mxu0 %v1362_v5 }
 0x23a   :  { %2515 = vmatmul.mubr.bf16.gmra.mrb[92].mxu0 %v1363_v4 }
 0x23b   :  { %2552 = shalt.err (!%p2549_p4)
}
 0x23c   :  { %s2553_s12 = scalar_lea.hbm %s3414_s7, 4096 }
 0x23d   :  { %p2554_p5 = scmp.ne.s32.totalorder %s3414_s7, %s2553_s12  ;;  %p2557_p6 = scmp.lt.u32.totalorder %s2553_s12, %s3414_s7 }
 0x23f   :  { %p2559_p7 = pnand %p2557_p6, %p2554_p5 }
 0x241   :  { %2562 = shalt.err (!%p2559_p7)
}
 0x242   :  { %s2566_s6 = smov 64   ;;  %s2567_s3 = smov 4   ;;  %vm1724_vm2 = vcmask 7168  }
 0x243   :  { %1800 = dma.vmem_to_hbm [thread:$0]  %s1795_s5, 4096, %s3414_s7, [#allocation3], %s2566_s6, %s2566_s6, %s2567_s3  }
 0x295   :  { %v2456_v27 = vpop.f32.mrb[32].mxu0 }
 0x296   :  { %v1478_v7 = vadd.f32 %v2456_v27, %v3073_v6  ;;  %v1469_v8 = vpop.f32.mrb[33].mxu0 }
 0x297   :  { %v1470_v9 = vadd.f32 %v3073_v6, %v1469_v8  ;;  %v2457_v10 = vpop.f32.mrb[34].mxu0 }
 0x298   :  { %1727 = vst.msk [vmem:[%s3415_s8 + $0x10] sm:$0xff] %vm1724_vm2, %v1478_v7  ;;  %v1481_v11 = vadd.f32 %v2457_v10, %v3073_v6  ;;  %v1472_v12 = vpop.f32.mrb[35].mxu0 }
 0x299   :  { %1725 = vst.msk [vmem:[%s3415_s8] sm:$0xff] %vm1724_vm2, %v1470_v9  ;;  %v1473_v13 = vadd.f32 %v3073_v6, %v1472_v12 }
 0x29a   :  { %1728 = vst.msk [vmem:[%s3415_s8 + $0x18] sm:$0xff] %vm1724_vm2, %v1481_v11 }
 0x29b   :  { %1726 = vst.msk [vmem:[%s3415_s8 + $0x8] sm:$0xff] %vm1724_vm2, %v1473_v13 }
 0x29d   :  { %v2460_v14 = vpop.f32.mrb[36].mxu0 }
 0x29e   :  { %v1494_v15 = vadd.f32 %v2460_v14, %v3073_v6  ;;  %v1485_v16 = vpop.f32.mrb[37].mxu0 }
 0x29f   :  { %v1486_v17 = vadd.f32 %v3073_v6, %v1485_v16  ;;  %v2461_v18 = vpop.f32.mrb[38].mxu0 }
 0x2a0   :  { %1731 = vst.msk [vmem:[%s3415_s8 + $0x30] sm:$0xff] %vm1724_vm2, %v1494_v15  ;;  %v1497_v20 = vadd.f32 %v2461_v18, %v3073_v6  ;;  %v1488_v21 = vpop.f32.mrb[39].mxu0 }
 0x2a1   :  { %1729 = vst.msk [vmem:[%s3415_s8 + $0x20] sm:$0xff] %vm1724_vm2, %v1486_v17  ;;  %v1489_v24 = vadd.f32 %v3073_v6, %v1488_v21 }
 0x2a2   :  { %1732 = vst.msk [vmem:[%s3415_s8 + $0x38] sm:$0xff] %vm1724_vm2, %v1497_v20 }
 0x2a3   :  { %1730 = vst.msk [vmem:[%s3415_s8 + $0x28] sm:$0xff] %vm1724_vm2, %v1489_v24 }
 0x2a5   :  { %v2464_v26 = vpop.f32.mrb[40].mxu0 }
 0x2a6   :  { %v1510_v28 = vadd.f32 %v2464_v26, %v3073_v6  ;;  %v1501_v29 = vpop.f32.mrb[41].mxu0 }
 0x2a7   :  { %v1502_v31 = vadd.f32 %v3073_v6, %v1501_v29  ;;  %v2465_v32 = vpop.f32.mrb[42].mxu0 }
 0x2a8   :  { %1735 = vst.msk [vmem:[%s3415_s8 + $0x50] sm:$0xff] %vm1724_vm2, %v1510_v28  ;;  %v1513_v33 = vadd.f32 %v2465_v32, %v3073_v6  ;;  %v1504_v34 = vpop.f32.mrb[43].mxu0 }
 0x2a9   :  { %1733 = vst.msk [vmem:[%s3415_s8 + $0x40] sm:$0xff] %vm1724_vm2, %v1502_v31  ;;  %v1505_v35 = vadd.f32 %v3073_v6, %v1504_v34 }
 0x2aa   :  { %1736 = vst.msk [vmem:[%s3415_s8 + $0x58] sm:$0xff] %vm1724_vm2, %v1513_v33 }
 0x2ab   :  { %1734 = vst.msk [vmem:[%s3415_s8 + $0x48] sm:$0xff] %vm1724_vm2, %v1505_v35 }
 0x2ad   :  { %v2468_v36 = vpop.f32.mrb[44].mxu0 }
 0x2ae   :  { %v1526_v37 = vadd.f32 %v2468_v36, %v3073_v6  ;;  %v1517_v38 = vpop.f32.mrb[45].mxu0 }
 0x2af   :  { %v1518_v42 = vadd.f32 %v3073_v6, %v1517_v38  ;;  %v2469_v30 = vpop.f32.mrb[46].mxu0 }
 0x2b0   :  { %1739 = vst.msk [vmem:[%s3415_s8 + $0x70] sm:$0xff] %vm1724_vm2, %v1526_v37  ;;  %v1529_v58 = vadd.f32 %v2469_v30, %v3073_v6  ;;  %v1520_v61 = vpop.f32.mrb[47].mxu0 }
 0x2b1   :  { %1737 = vst.msk [vmem:[%s3415_s8 + $0x60] sm:$0xff] %vm1724_vm2, %v1518_v42  ;;  %v1521_v22 = vadd.f32 %v3073_v6, %v1520_v61 }
 0x2b2   :  { %1740 = vst.msk [vmem:[%s3415_s8 + $0x78] sm:$0xff] %vm1724_vm2, %v1529_v58 }
 0x2b3   :  { %1738 = vst.msk [vmem:[%s3415_s8 + $0x68] sm:$0xff] %vm1724_vm2, %v1521_v22 }
 0x2b5   :  { %v2472_v25 = vpop.f32.mrb[48].mxu0 }
 0x2b6   :  { %v1542_v53 = vadd.f32 %v2472_v25, %v3073_v6  ;;  %v1533_v56 = vpop.f32.mrb[49].mxu0 }
 0x2b7   :  { %v1534_v19 = vadd.f32 %v3073_v6, %v1533_v56  ;;  %v2473_v23 = vpop.f32.mrb[50].mxu0 }
 0x2b8   :  { %1743 = vst.msk [vmem:[%s3415_s8 + $0x90] sm:$0xff] %vm1724_vm2, %v1542_v53  ;;  %v1545_v39 = vadd.f32 %v2473_v23, %v3073_v6  ;;  %v1536_v40 = vpop.f32.mrb[51].mxu0 }
 0x2b9   :  { %1741 = vst.msk [vmem:[%s3415_s8 + $0x80] sm:$0xff] %vm1724_vm2, %v1534_v19  ;;  %v1537_v41 = vadd.f32 %v3073_v6, %v1536_v40 }
 0x2ba   :  { %1744 = vst.msk [vmem:[%s3415_s8 + $0x98] sm:$0xff] %vm1724_vm2, %v1545_v39 }
 0x2bb   :  { %1742 = vst.msk [vmem:[%s3415_s8 + $0x88] sm:$0xff] %vm1724_vm2, %v1537_v41 }
 0x2bd   :  { %v2476_v43 = vpop.f32.mrb[52].mxu0 }
 0x2be   :  { %v1558_v44 = vadd.f32 %v2476_v43, %v3073_v6  ;;  %v1549_v45 = vpop.f32.mrb[53].mxu0 }
 0x2bf   :  { %v1550_v46 = vadd.f32 %v3073_v6, %v1549_v45  ;;  %v2477_v47 = vpop.f32.mrb[54].mxu0 }
 0x2c0   :  { %1747 = vst.msk [vmem:[%s3415_s8 + $0xb0] sm:$0xff] %vm1724_vm2, %v1558_v44  ;;  %v1561_v48 = vadd.f32 %v2477_v47, %v3073_v6  ;;  %v1552_v49 = vpop.f32.mrb[55].mxu0 }
 0x2c1   :  { %1745 = vst.msk [vmem:[%s3415_s8 + $0xa0] sm:$0xff] %vm1724_vm2, %v1550_v46  ;;  %v1553_v50 = vadd.f32 %v3073_v6, %v1552_v49 }
 0x2c2   :  { %1748 = vst.msk [vmem:[%s3415_s8 + $0xb8] sm:$0xff] %vm1724_vm2, %v1561_v48 }
 0x2c3   :  { %1746 = vst.msk [vmem:[%s3415_s8 + $0xa8] sm:$0xff] %vm1724_vm2, %v1553_v50 }
 0x2c5   :  { %v2480_v51 = vpop.f32.mrb[56].mxu0 }
 0x2c6   :  { %v1574_v52 = vadd.f32 %v2480_v51, %v3073_v6  ;;  %v1565_v54 = vpop.f32.mrb[57].mxu0 }
 0x2c7   :  { %v1566_v55 = vadd.f32 %v3073_v6, %v1565_v54  ;;  %v2481_v57 = vpop.f32.mrb[58].mxu0 }
 0x2c8   :  { %1751 = vst.msk [vmem:[%s3415_s8 + $0xd0] sm:$0xff] %vm1724_vm2, %v1574_v52  ;;  %v1577_v59 = vadd.f32 %v2481_v57, %v3073_v6  ;;  %v1568_v60 = vpop.f32.mrb[59].mxu0 }
 0x2c9   :  { %1749 = vst.msk [vmem:[%s3415_s8 + $0xc0] sm:$0xff] %vm1724_vm2, %v1566_v55  ;;  %v1569_v62 = vadd.f32 %v3073_v6, %v1568_v60 }
 0x2ca   :  { %1752 = vst.msk [vmem:[%s3415_s8 + $0xd8] sm:$0xff] %vm1724_vm2, %v1577_v59 }
 0x2cb   :  { %1750 = vst.msk [vmem:[%s3415_s8 + $0xc8] sm:$0xff] %vm1724_vm2, %v1569_v62 }
 0x2cd   :  { %v2484_v63 = vpop.f32.mrb[60].mxu0 }
 0x2ce   :  { %v1590_v0 = vadd.f32 %v2484_v63, %v3073_v6  ;;  %v1581_v1 = vpop.f32.mrb[61].mxu0 }
 0x2cf   :  { %v1582_v2 = vadd.f32 %v3073_v6, %v1581_v1  ;;  %v2485_v3 = vpop.f32.mrb[62].mxu0 }
 0x2d0   :  { %1755 = vst.msk [vmem:[%s3415_s8 + $0xf0] sm:$0xff] %vm1724_vm2, %v1590_v0  ;;  %v1593_v4 = vadd.f32 %v2485_v3, %v3073_v6  ;;  %v1584_v5 = vpop.f32.mrb[63].mxu0 }
 0x2d1   :  { %1753 = vst.msk [vmem:[%s3415_s8 + $0xe0] sm:$0xff] %vm1724_vm2, %v1582_v2  ;;  %v1585_v27 = vadd.f32 %v3073_v6, %v1584_v5 }
 0x2d2   :  { %1756 = vst.msk [vmem:[%s3415_s8 + $0xf8] sm:$0xff] %vm1724_vm2, %v1593_v4 }
 0x2d3   :  { %1754 = vst.msk [vmem:[%s3415_s8 + $0xe8] sm:$0xff] %vm1724_vm2, %v1585_v27 }
 0x2d5   :  { %v2488_v7 = vpop.f32.mrb[64].mxu0 }
 0x2d6   :  { %v1606_v8 = vadd.f32 %v2488_v7, %v3073_v6  ;;  %v1597_v9 = vpop.f32.mrb[65].mxu0 }
 0x2d7   :  { %v1598_v10 = vadd.f32 %v3073_v6, %v1597_v9  ;;  %v2489_v11 = vpop.f32.mrb[66].mxu0 }
 0x2d8   :  { %1759 = vst.msk [vmem:[%s3415_s8 + $0x110] sm:$0xff] %vm1724_vm2, %v1606_v8  ;;  %v1609_v12 = vadd.f32 %v2489_v11, %v3073_v6  ;;  %v1600_v13 = vpop.f32.mrb[67].mxu0 }
 0x2d9   :  { %1757 = vst.msk [vmem:[%s3415_s8 + $0x100] sm:$0xff] %vm1724_vm2, %v1598_v10  ;;  %v1601_v14 = vadd.f32 %v3073_v6, %v1600_v13 }
 0x2da   :  { %1760 = vst.msk [vmem:[%s3415_s8 + $0x118] sm:$0xff] %vm1724_vm2, %v1609_v12 }
 0x2db   :  { %1758 = vst.msk [vmem:[%s3415_s8 + $0x108] sm:$0xff] %vm1724_vm2, %v1601_v14 }
 0x2dd   :  { %v2492_v15 = vpop.f32.mrb[68].mxu0 }
 0x2de   :  { %v1622_v16 = vadd.f32 %v2492_v15, %v3073_v6  ;;  %v1613_v17 = vpop.f32.mrb[69].mxu0 }
 0x2df   :  { %v1614_v18 = vadd.f32 %v3073_v6, %v1613_v17  ;;  %v2493_v20 = vpop.f32.mrb[70].mxu0 }
 0x2e0   :  { %1763 = vst.msk [vmem:[%s3415_s8 + $0x130] sm:$0xff] %vm1724_vm2, %v1622_v16  ;;  %v1625_v21 = vadd.f32 %v2493_v20, %v3073_v6  ;;  %v1616_v24 = vpop.f32.mrb[71].mxu0 }
 0x2e1   :  { %1761 = vst.msk [vmem:[%s3415_s8 + $0x120] sm:$0xff] %vm1724_vm2, %v1614_v18  ;;  %v1617_v26 = vadd.f32 %v3073_v6, %v1616_v24 }
 0x2e2   :  { %1764 = vst.msk [vmem:[%s3415_s8 + $0x138] sm:$0xff] %vm1724_vm2, %v1625_v21 }
 0x2e3   :  { %1762 = vst.msk [vmem:[%s3415_s8 + $0x128] sm:$0xff] %vm1724_vm2, %v1617_v26 }
 0x2e5   :  { %v2496_v28 = vpop.f32.mrb[72].mxu0 }
 0x2e6   :  { %v1638_v29 = vadd.f32 %v2496_v28, %v3073_v6  ;;  %v1629_v31 = vpop.f32.mrb[73].mxu0 }
 0x2e7   :  { %v1630_v32 = vadd.f32 %v3073_v6, %v1629_v31  ;;  %v2497_v33 = vpop.f32.mrb[74].mxu0 }
 0x2e8   :  { %1767 = vst.msk [vmem:[%s3415_s8 + $0x150] sm:$0xff] %vm1724_vm2, %v1638_v29  ;;  %v1641_v34 = vadd.f32 %v2497_v33, %v3073_v6  ;;  %v1632_v35 = vpop.f32.mrb[75].mxu0 }
 0x2e9   :  { %1765 = vst.msk [vmem:[%s3415_s8 + $0x140] sm:$0xff] %vm1724_vm2, %v1630_v32  ;;  %v1633_v36 = vadd.f32 %v3073_v6, %v1632_v35 }
 0x2ea   :  { %1768 = vst.msk [vmem:[%s3415_s8 + $0x158] sm:$0xff] %vm1724_vm2, %v1641_v34 }
 0x2eb   :  { %1766 = vst.msk [vmem:[%s3415_s8 + $0x148] sm:$0xff] %vm1724_vm2, %v1633_v36 }
 0x2ed   :  { %v2500_v37 = vpop.f32.mrb[76].mxu0 }
 0x2ee   :  { %v1654_v38 = vadd.f32 %v2500_v37, %v3073_v6  ;;  %v1645_v42 = vpop.f32.mrb[77].mxu0 }
 0x2ef   :  { %v1646_v30 = vadd.f32 %v3073_v6, %v1645_v42  ;;  %v2501_v58 = vpop.f32.mrb[78].mxu0 }
 0x2f0   :  { %1771 = vst.msk [vmem:[%s3415_s8 + $0x170] sm:$0xff] %vm1724_vm2, %v1654_v38  ;;  %v1657_v61 = vadd.f32 %v2501_v58, %v3073_v6  ;;  %v1648_v22 = vpop.f32.mrb[79].mxu0 }
 0x2f1   :  { %1769 = vst.msk [vmem:[%s3415_s8 + $0x160] sm:$0xff] %vm1724_vm2, %v1646_v30  ;;  %v1649_v25 = vadd.f32 %v3073_v6, %v1648_v22 }
 0x2f2   :  { %1772 = vst.msk [vmem:[%s3415_s8 + $0x178] sm:$0xff] %vm1724_vm2, %v1657_v61 }
 0x2f3   :  { %1770 = vst.msk [vmem:[%s3415_s8 + $0x168] sm:$0xff] %vm1724_vm2, %v1649_v25 }
 0x2f5   :  { %v2504_v53 = vpop.f32.mrb[80].mxu0 }
 0x2f6   :  { %v1670_v56 = vadd.f32 %v2504_v53, %v3073_v6  ;;  %v1661_v19 = vpop.f32.mrb[81].mxu0 }
 0x2f7   :  { %v1662_v23 = vadd.f32 %v3073_v6, %v1661_v19  ;;  %v2505_v39 = vpop.f32.mrb[82].mxu0 }
 0x2f8   :  { %1775 = vst.msk [vmem:[%s3415_s8 + $0x190] sm:$0xff] %vm1724_vm2, %v1670_v56  ;;  %v1673_v40 = vadd.f32 %v2505_v39, %v3073_v6  ;;  %v1664_v41 = vpop.f32.mrb[83].mxu0 }
 0x2f9   :  { %1773 = vst.msk [vmem:[%s3415_s8 + $0x180] sm:$0xff] %vm1724_vm2, %v1662_v23  ;;  %v1665_v43 = vadd.f32 %v3073_v6, %v1664_v41 }
 0x2fa   :  { %1776 = vst.msk [vmem:[%s3415_s8 + $0x198] sm:$0xff] %vm1724_vm2, %v1673_v40 }
 0x2fb   :  { %1774 = vst.msk [vmem:[%s3415_s8 + $0x188] sm:$0xff] %vm1724_vm2, %v1665_v43 }
 0x2fd   :  { %v2508_v44 = vpop.f32.mrb[84].mxu0 }
 0x2fe   :  { %v1686_v45 = vadd.f32 %v2508_v44, %v3073_v6  ;;  %v1677_v46 = vpop.f32.mrb[85].mxu0 }
 0x2ff   :  { %v1678_v47 = vadd.f32 %v3073_v6, %v1677_v46  ;;  %v2509_v48 = vpop.f32.mrb[86].mxu0 }
 0x300   :  { %1779 = vst.msk [vmem:[%s3415_s8 + $0x1b0] sm:$0xff] %vm1724_vm2, %v1686_v45  ;;  %v1689_v49 = vadd.f32 %v2509_v48, %v3073_v6  ;;  %v1680_v50 = vpop.f32.mrb[87].mxu0 }
 0x301   :  { %1777 = vst.msk [vmem:[%s3415_s8 + $0x1a0] sm:$0xff] %vm1724_vm2, %v1678_v47  ;;  %v1681_v51 = vadd.f32 %v3073_v6, %v1680_v50 }
 0x302   :  { %1780 = vst.msk [vmem:[%s3415_s8 + $0x1b8] sm:$0xff] %vm1724_vm2, %v1689_v49 }
 0x303   :  { %1778 = vst.msk [vmem:[%s3415_s8 + $0x1a8] sm:$0xff] %vm1724_vm2, %v1681_v51 }
 0x305   :  { %v2512_v52 = vpop.f32.mrb[88].mxu0 }
 0x306   :  { %v1702_v54 = vadd.f32 %v2512_v52, %v3073_v6  ;;  %v1693_v55 = vpop.f32.mrb[89].mxu0 }
 0x307   :  { %v1694_v57 = vadd.f32 %v3073_v6, %v1693_v55  ;;  %v2513_v59 = vpop.f32.mrb[90].mxu0 }
 0x308   :  { %1783 = vst.msk [vmem:[%s3415_s8 + $0x1d0] sm:$0xff] %vm1724_vm2, %v1702_v54  ;;  %v1705_v60 = vadd.f32 %v2513_v59, %v3073_v6  ;;  %v1696_v62 = vpop.f32.mrb[91].mxu0 }
 0x309   :  { %1781 = vst.msk [vmem:[%s3415_s8 + $0x1c0] sm:$0xff] %vm1724_vm2, %v1694_v57  ;;  %v1697_v63 = vadd.f32 %v3073_v6, %v1696_v62 }
 0x30a   :  { %1784 = vst.msk [vmem:[%s3415_s8 + $0x1d8] sm:$0xff] %vm1724_vm2, %v1705_v60 }
 0x30b   :  { %1782 = vst.msk [vmem:[%s3415_s8 + $0x1c8] sm:$0xff] %vm1724_vm2, %v1697_v63 }
 0x30d   :  { %v2516_v0 = vpop.f32.mrb[92].mxu0 }
 0x30e   :  { %v1718_v1 = vadd.f32 %v2516_v0, %v3073_v6  ;;  %v1709_v2 = vpop.f32.mrb[93].mxu0 }
 0x30f   :  { %v1710_v3 = vadd.f32 %v3073_v6, %v1709_v2  ;;  %v2517_v4 = vpop.f32.mrb[94].mxu0 }
 0x310   :  { %1787 = vst.msk [vmem:[%s3415_s8 + $0x1f0] sm:$0xff] %vm1724_vm2, %v1718_v1  ;;  %v1721_v5 = vadd.f32 %v2517_v4, %v3073_v6  ;;  %v1712_v27 = vpop.f32.mrb[95].mxu0 }
 0x311   :  { %1785 = vst.msk [vmem:[%s3415_s8 + $0x1e0] sm:$0xff] %vm1724_vm2, %v1710_v3  ;;  %v1713_v7 = vadd.f32 %v3073_v6, %v1712_v27 }
 0x312   :  { %1788 = vst.msk [vmem:[%s3415_s8 + $0x1f8] sm:$0xff] %vm1724_vm2, %v1721_v5 }
 0x313   :  { %1786 = vst.msk [vmem:[%s3415_s8 + $0x1e8] sm:$0xff] %vm1724_vm2, %v1713_v7 }
 0x314   :  { %2563 = dma.done.wait [#allocation3], 4096  }
 0x315   :  { %2564 = vsyncadd [#allocation3], 4294963200 }
 0x316   :  { %1808 = vsyncpa [#allocation3], 1 }

</bundles_post_ra>
